<compile_context>
chip_gen: v7x
topology: tpu7x:2x2x1
jax: 0.10.0
libtpu: 0.0.40
codegen_flags: <defaults>
</compile_context>

<pallas_src>
import functools

import jax
import jax.numpy as jnp
from jax.experimental import pallas as pl
from jax.experimental.pallas import tpu as pltpu
from jax.scipy.special import gammaln

_LANE = 128
_SUBLANE = 8


def _round_up(n, m):
    return ((n + m - 1) // m) * m


def _pad2(a, rows, cols):
    return jnp.pad(a, ((0, rows - a.shape[0]), (0, cols - a.shape[1])))


def _maybe_pad(a, rows, cols):
    a = a.astype(jnp.float32)
    if a.shape == (rows, cols):
        return a                      # already aligned: skip the extra HBM copy
    return _pad2(a, rows, cols)


# ---------------------------------------------------------------- hardware queries
@functools.lru_cache(maxsize=1)
def _vmem_budget_bytes():
    """Generation-aware VMEM budget: ~75% of physical (96 MiB v5e/v6e, 48 MiB v7x)."""
    try:
        cap = int(pltpu.get_tpu_info().vmem_capacity_bytes)
    except Exception:
        cap = 64 * 1024 * 1024        # conservative (v7x-class) fallback
    return min((cap * 3) // 4, 100 * 1024 * 1024)


@functools.lru_cache(maxsize=1)
def _num_tensorcores():
    """Best-effort TensorCore-per-chip count (v7x has 2); defaults to 1."""
    try:
        info = pltpu.get_tpu_info()
        for attr in ("num_cores", "core_count", "num_tensorcores", "tensorcore_count"):
            v = getattr(info, attr, None)
            if v:
                return max(1, int(v))
    except Exception:
        pass
    try:
        v = getattr(jax.devices()[0], "num_cores", None)
        if v:
            return max(1, int(v))
    except Exception:
        pass
    return 1


def _pick_tb(b8, n_cores):
    """Largest batch tile (multiple of 8, <=256) that divides the padded batch and,
    when possible, still leaves >= n_cores grid steps for megacore sharding."""
    cands = [t for t in range(_SUBLANE, min(256, b8) + 1, _SUBLANE) if b8 % t == 0]
    multi = [t for t in cands if b8 // t >= max(1, n_cores)]
    return max(multi) if multi else max(cands)


# ------------------------------------------------------------------------- kernel
def _dense_relu_chain(h, param_refs, n_layers):
    """n_layers of (Linear -> ReLU); bf16 MXU inputs, f32 accumulation."""
    for i in range(n_layers):
        w = param_refs[2 * i][...]        # [K_pad, N_pad]  bf16
        b = param_refs[2 * i + 1][...]    # [1, N_pad]      f32
        h = jnp.maximum(
            jnp.dot(h.astype(jnp.bfloat16), w,
                    preferred_element_type=jnp.float32) + b,
            0.0)
    return h


def _vae_kernel(n_enc_hidden, n_dec_layers, latent_pad, *refs):
    # refs = (x, eps,
    #         enc_w0,b0,..., w_head,b_head,   (head = [mean | logvar] concatenated)
    #         dec_w0,b0,...,
    #         mean_out, logvar_out, z_out, logits_out)
    x_ref, eps_ref = refs[0], refs[1]
    i = 2
    enc_p = refs[i:i + 2 * n_enc_hidden]; i += 2 * n_enc_hidden
    w_head_ref, b_head_ref = refs[i], refs[i + 1]; i += 2
    dec_p = refs[i:i + 2 * n_dec_layers]; i += 2 * n_dec_layers
    mean_ref, logvar_ref, z_ref, logits_ref = refs[i:i + 4]

    # Encoder hidden stack: activations stay in vregs/VMEM.
    h = _dense_relu_chain(x_ref[...], enc_p, n_enc_hidden)

    # Fused mean|logvar head: one MXU matmul on the concatenated weight, then
    # static tile-aligned column split (free).
    head = (jnp.dot(h.astype(jnp.bfloat16), w_head_ref[...],
                    preferred_element_type=jnp.float32) + b_head_ref[...])
    mean = head[:, :latent_pad]
    logvar = head[:, latent_pad:]
    z = mean + jnp.exp(0.5 * logvar) * eps_ref[...]   # reparameterization (EUP exp)

    mean_ref[...] = mean
    logvar_ref[...] = logvar
    z_ref[...] = z

    # Decoder fused in the same kernel: z never leaves VMEM.
    logits_ref[...] = _dense_relu_chain(z, dec_p, n_dec_layers).astype(logits_ref.dtype)


# ------------------------------------------------------------------------ wrappers
def _batch_spec(tb, width):
    return pl.BlockSpec((tb, width), lambda i: (i, 0))          # batch-tiled, lane-dense


def _weight_spec(shape, weight_buffers):
    if weight_buffers == 1:
        # Grid-invariant block: single buffer (double-buffering a constant block
        # would only double its VMEM footprint).
        return pl.BlockSpec(shape, lambda i: (0, 0),
                            pipeline_mode=pl.Buffered(buffer_count=1))
    return pl.BlockSpec(shape, lambda i: (0, 0))


def _vae_call(x_pad, eps_pad, enc_hidden, head, dec_params, *, tb, weight_buffers):
    b_pad, d0 = x_pad.shape
    latent_pad = head[0].shape[1] // 2
    n_out = dec_params[-1][0].shape[1]
    all_params = list(enc_hidden) + [head] + list(dec_params)
    flat = [a for pair in all_params for a in pair]

    in_specs = [_batch_spec(tb, d0), _batch_spec(tb, latent_pad)]
    for w, b in all_params:
        in_specs += [_weight_spec(w.shape, weight_buffers),
                     _weight_spec(b.shape, weight_buffers)]
    out_specs = [_batch_spec(tb, latent_pad)] * 3 + [_batch_spec(tb, n_out)]
    out_shape = ([jax.ShapeDtypeStruct((b_pad, latent_pad), jnp.float32)] * 3
                 + [jax.ShapeDtypeStruct((b_pad, n_out), jnp.float32)])

    # Explicit VMEM accounting: weights x buffer count, double-buffered batch-tiled IO,
    # plus live activations (f32 + bf16 copy + f32 matmul result) at the widest layer.
    param_bytes = sum(int(a.size) * a.dtype.itemsize for a in flat)
    max_width = max(max(w.shape) for w, _ in all_params)
    resident = (weight_buffers * param_bytes
                + 2 * tb * (d0 + latent_pad) * 4
                + 2 * tb * (3 * latent_pad + n_out) * 4
                + tb * max_width * 10)
    budget = _vmem_budget_bytes()
    assert resident <= budget, (
        f"resident VMEM estimate {resident}B exceeds budget {budget}B; shrink tb")
    vmem_limit = int(min(budget, max(2 * resident, 16 * 1024 * 1024)))

    flops = 2 * b_pad * sum(w.shape[0] * w.shape[1] for w, _ in all_params)
    bytes_accessed = int((x_pad.size + eps_pad.size) * 4 + param_bytes
                         + b_pad * (3 * latent_pad + n_out) * 4)

    return pl.pallas_call(
        functools.partial(_vae_kernel, len(enc_hidden), len(dec_params), latent_pad),
        out_shape=out_shape,
        grid=(b_pad // tb,),
        in_specs=in_specs,
        out_specs=out_specs,
        compiler_params=pltpu.CompilerParams(
            dimension_semantics=("parallel",),
            vmem_limit_bytes=vmem_limit),
        cost_estimate=pl.CostEstimate(
            flops=flops, transcendentals=b_pad * latent_pad,
            bytes_accessed=bytes_accessed),
    )(x_pad, eps_pad, *flat)


# --------------------------------------------------------------- loss tail (plain JAX)
def _vae_loss(x, mean, logvar, z, logits, beta):
    # torch.distributions.Binomial(total_count=2, logits=...).log_prob(x)
    n = 2.0
    log_px_elem = (x * logits
                   - gammaln(x + 1.0) - gammaln(n - x + 1.0)
                   - (n * jnp.maximum(logits, 0.0)
                      + n * jnp.log1p(jnp.exp(-jnp.abs(logits)))
                      - gammaln(n + 1.0)))
    log_px = jnp.nansum(log_px_elem)
    kl = -0.5 * jnp.sum(1.0 + logvar - mean ** 2 - jnp.exp(logvar),
                        axis=1, keepdims=True)
    elbo = log_px - beta * jnp.sum(kl)
    loss = -elbo
    outputs = {"px_logits": logits, "z": z, "mean": mean, "logvar": logvar}
    diagnostics = {"elbo": elbo, "log_px": log_px, "kl": jnp.sum(kl)}
    return loss, outputs, diagnostics


# ------------------------------------------------------------------------- forward
@functools.partial(jax.jit,
                   static_argnames=("n_in", "n_latent", "beta", "tb", "weight_buffers"))
def _vae_forward_impl(x, eps, enc_hidden, head, dec_params, *,
                      n_in, n_latent, beta, tb, weight_buffers):
    b = x.shape[0]
    d0_pad = enc_hidden[0][0].shape[0] if enc_hidden else head[0].shape[0]
    latent_pad = head[0].shape[1] // 2
    b_pad = _round_up(b, tb)              # == round_up(b, 8) since tb divides it
    x_pad = _maybe_pad(x, b_pad, d0_pad)
    eps_pad = _maybe_pad(eps, b_pad, latent_pad)
    mean_p, logvar_p, z_p, logits_p = _vae_call(
        x_pad, eps_pad, enc_hidden, head, dec_params,
        tb=tb, weight_buffers=weight_buffers)
    return _vae_loss(x.astype(jnp.float32),
                     mean_p[:b, :n_latent], logvar_p[:b, :n_latent],
                     z_p[:b, :n_latent], logits_p[:b, :n_in], beta)


def vae_forward(x, eps, enc_hidden, head, dec_params, *, n_in, n_latent, beta=1.0):
    b8 = _round_up(x.shape[0], _SUBLANE)
    tb = _pick_tb(b8, _num_tensorcores())
    kwargs = dict(n_in=n_in, n_latent=n_latent, beta=float(beta), tb=tb)
    try:
        return _vae_forward_impl(x, eps, enc_hidden, head, dec_params,
                                 weight_buffers=1, **kwargs)
    except Exception:
        # Fallback if single-buffered (Buffered(1)) weight specs are unsupported.
        return _vae_forward_impl(x, eps, enc_hidden, head, dec_params,
                                 weight_buffers=2, **kwargs)


def vae_forward_ref(x, eps, enc_hidden, head, dec_params, *, n_in, n_latent, beta=1.0):
    """Pure-JAX reference mirroring the kernel numerics (same padded bf16 weights)."""
    b = x.shape[0]
    d0_pad = enc_hidden[0][0].shape[0] if enc_hidden else head[0].shape[0]
    latent_pad = head[0].shape[1] // 2
    b8 = _round_up(b, _SUBLANE)
    x_pad = _maybe_pad(x, b8, d0_pad)
    eps_pad = _maybe_pad(eps, b8, latent_pad)

    def chain(h, params):
        for w, bb in params:
            h = jnp.maximum(
                jnp.dot(h.astype(jnp.bfloat16), w,
                        preferred_element_type=jnp.float32) + bb, 0.0)
        return h

    h = chain(x_pad, enc_hidden)
    hd = (jnp.dot(h.astype(jnp.bfloat16), head[0],
                  preferred_element_type=jnp.float32) + head[1])
    mean_p, logvar_p = hd[:, :latent_pad], hd[:, latent_pad:]
    z_p = mean_p + jnp.exp(0.5 * logvar_p) * eps_pad
    logits_p = chain(z_p, dec_params)
    return _vae_loss(x.astype(jnp.float32),
                     mean_p[:b, :n_latent], logvar_p[:b, :n_latent],
                     z_p[:b, :n_latent], logits_p[:b, :n_in], beta)


# --------------------------------------------------------------------------- params
def init_vae_params(key, n_in, n_latent, n_hidden):
    """Mirror VariationalAutoencoder.__init__ (init_weights=True: xavier_normal_
    weights, zero biases; width=('decaying', 'increasing'))."""
    enc_widths = [n_in]
    for _ in range(n_hidden):
        enc_widths.append(enc_widths[-1] // 2)
    dec_widths = [n_latent]
    for _ in range(n_hidden):
        dec_widths.append(dec_widths[-1] * 2)
    assert dec_widths[-1] == n_in, (
        "decoder output width n_latent*2**n_hidden must equal n_in so that "
        "Binomial.log_prob(x) is well defined")

    def xavier(k, fan_in, fan_out):
        std = (2.0 / (fan_in + fan_out)) ** 0.5
        w = std * jax.random.normal(k, (fan_in, fan_out), dtype=jnp.float32)
        b = jnp.zeros((1, fan_out), jnp.float32)
        return w, b

    enc_params, dec_params = [], []
    for i in range(n_hidden):
        key, k = jax.random.split(key)
        enc_params.append(xavier(k, enc_widths[i], enc_widths[i + 1]))
    key, k_mu, k_lv = jax.random.split(key, 3)
    enc_params.append(xavier(k_mu, enc_widths[-1], n_latent))   # mean head
    enc_params.append(xavier(k_lv, enc_widths[-1], n_latent))   # logvar head
    for i in range(n_hidden):
        key, k = jax.random.split(key)
        dec_params.append(xavier(k, dec_widths[i], dec_widths[i + 1]))
    return enc_params, dec_params


def pad_and_pack_params(enc_params, dec_params):
    """Zero-pad every Linear to lane-aligned [K_pad, N_pad] (weights -> bf16) and
    concatenate the mean/logvar heads into one [K_pad, 2*latent_pad] weight."""
    def pad(params):
        out = []
        for w, b in params:
            kp = _round_up(w.shape[0], _LANE)
            np_ = _round_up(w.shape[1], _LANE)
            out.append((_pad2(w, kp, np_).astype(jnp.bfloat16), _pad2(b, 1, np_)))
        return out

    enc_pad, dec_pad = pad(enc_params), pad(dec_params)
    enc_hidden = tuple(enc_pad[:-2])
    (w_mu, b_mu), (w_lv, b_lv) = enc_pad[-2], enc_pad[-1]
    head = (jnp.concatenate([w_mu, w_lv], axis=1),
            jnp.concatenate([b_mu, b_lv], axis=1))
    return enc_hidden, head, tuple(dec_pad)


if __name__ == "__main__":
    key = jax.random.PRNGKey(0)
    batch, n_in, n_latent, n_hidden = 2, 32, 4, 3   # enc: 32->16->8->4, dec: 4->8->16->32

    k_par, k_x, k_eps = jax.random.split(key, 3)
    enc_params, dec_params = init_vae_params(k_par, n_in, n_latent, n_hidden)
    enc_hidden, head, dec_pad = pad_and_pack_params(enc_params, dec_params)

    # x: count data in {0,1,2} (Binomial(total_count=2) observations);
    # eps: reparameterization noise (torch.randn in sample_posterior).
    x = jax.random.randint(k_x, (batch, n_in), 0, 3).astype(jnp.float32)
    eps = jax.random.normal(k_eps, (batch, n_latent), dtype=jnp.float32)

    loss, outputs, diag = vae_forward(x, eps, enc_hidden, head, dec_pad,
                                      n_in=n_in, n_latent=n_latent, beta=1.0)
    loss = jax.block_until_ready(loss)

    loss_ref, outputs_ref, _ = vae_forward_ref(
        x, eps, enc_hidden, head, dec_pad, n_in=n_in, n_latent=n_latent, beta=1.0)

    assert outputs["px_logits"].shape == (batch, n_in), outputs["px_logits"].shape
    assert outputs["z"].shape == (batch, n_latent), outputs["z"].shape
    for name in ("mean", "logvar", "z", "px_logits"):
        assert jnp.allclose(outputs[name], outputs_ref[name],
                            atol=1e-3, rtol=1e-3), name
    assert jnp.allclose(loss, loss_ref, atol=1e-2, rtol=1e-3), (loss, loss_ref)

    print("KERNEL_OK")
</pallas_src>

<mosaic_0001>
module attributes {stable_mosaic.version = 11 : i64} {
  func.func @_vae_kernel(%arg0: i32, %arg1: memref<8x128xf32, #tpu.memory_space<vmem>>, %arg2: memref<8x128xf32, #tpu.memory_space<vmem>>, %arg3: memref<128x128xbf16, #tpu.memory_space<vmem>>, %arg4: memref<1x128xf32, #tpu.memory_space<vmem>>, %arg5: memref<128x128xbf16, #tpu.memory_space<vmem>>, %arg6: memref<1x128xf32, #tpu.memory_space<vmem>>, %arg7: memref<128x128xbf16, #tpu.memory_space<vmem>>, %arg8: memref<1x128xf32, #tpu.memory_space<vmem>>, %arg9: memref<128x256xbf16, #tpu.memory_space<vmem>>, %arg10: memref<1x256xf32, #tpu.memory_space<vmem>>, %arg11: memref<128x128xbf16, #tpu.memory_space<vmem>>, %arg12: memref<1x128xf32, #tpu.memory_space<vmem>>, %arg13: memref<128x128xbf16, #tpu.memory_space<vmem>>, %arg14: memref<1x128xf32, #tpu.memory_space<vmem>>, %arg15: memref<128x128xbf16, #tpu.memory_space<vmem>>, %arg16: memref<1x128xf32, #tpu.memory_space<vmem>>, %arg17: memref<8x128xf32, #tpu.memory_space<vmem>>, %arg18: memref<8x128xf32, #tpu.memory_space<vmem>>, %arg19: memref<8x128xf32, #tpu.memory_space<vmem>>, %arg20: memref<8x128xf32, #tpu.memory_space<vmem>>) attributes {dimension_semantics = [#tpu.dimension_semantics<parallel>], iteration_bounds = array<i64: 1>, scalar_prefetch = 0 : i64, scratch_operands = 0 : i64, tpu.core_type = #tpu.core_type<tc>, window_params = [{transform_indices = @transform_0, window_bounds = array<i64: 8, 128>}, {transform_indices = @transform_1, window_bounds = array<i64: 8, 128>}, {pipeline_mode = #tpu.pipeline_mode<synchronous>, transform_indices = @transform_2, window_bounds = array<i64: 128, 128>}, {pipeline_mode = #tpu.pipeline_mode<synchronous>, transform_indices = @transform_3, window_bounds = array<i64: 1, 128>}, {pipeline_mode = #tpu.pipeline_mode<synchronous>, transform_indices = @transform_4, window_bounds = array<i64: 128, 128>}, {pipeline_mode = #tpu.pipeline_mode<synchronous>, transform_indices = @transform_5, window_bounds = array<i64: 1, 128>}, {pipeline_mode = #tpu.pipeline_mode<synchronous>, transform_indices = @transform_6, window_bounds = array<i64: 128, 128>}, {pipeline_mode = #tpu.pipeline_mode<synchronous>, transform_indices = @transform_7, window_bounds = array<i64: 1, 128>}, {pipeline_mode = #tpu.pipeline_mode<synchronous>, transform_indices = @transform_8, window_bounds = array<i64: 128, 256>}, {pipeline_mode = #tpu.pipeline_mode<synchronous>, transform_indices = @transform_9, window_bounds = array<i64: 1, 256>}, {pipeline_mode = #tpu.pipeline_mode<synchronous>, transform_indices = @transform_10, window_bounds = array<i64: 128, 128>}, {pipeline_mode = #tpu.pipeline_mode<synchronous>, transform_indices = @transform_11, window_bounds = array<i64: 1, 128>}, {pipeline_mode = #tpu.pipeline_mode<synchronous>, transform_indices = @transform_12, window_bounds = array<i64: 128, 128>}, {pipeline_mode = #tpu.pipeline_mode<synchronous>, transform_indices = @transform_13, window_bounds = array<i64: 1, 128>}, {pipeline_mode = #tpu.pipeline_mode<synchronous>, transform_indices = @transform_14, window_bounds = array<i64: 128, 128>}, {pipeline_mode = #tpu.pipeline_mode<synchronous>, transform_indices = @transform_15, window_bounds = array<i64: 1, 128>}, {transform_indices = @transform_16, window_bounds = array<i64: 8, 128>}, {transform_indices = @transform_17, window_bounds = array<i64: 8, 128>}, {transform_indices = @transform_18, window_bounds = array<i64: 8, 128>}, {transform_indices = @transform_19, window_bounds = array<i64: 8, 128>}]} {
    %c0 = arith.constant 0 : index
    %c0_0 = arith.constant 0 : index
    %0 = vector.load %arg1[%c0, %c0_0] : memref<8x128xf32, #tpu.memory_space<vmem>>, vector<8x128xf32>
    %c0_1 = arith.constant 0 : index
    %c0_2 = arith.constant 0 : index
    %1 = vector.load %arg3[%c0_1, %c0_2] : memref<128x128xbf16, #tpu.memory_space<vmem>>, vector<128x128xbf16>
    %c0_3 = arith.constant 0 : index
    %c0_4 = arith.constant 0 : index
    %2 = vector.load %arg4[%c0_3, %c0_4] : memref<1x128xf32, #tpu.memory_space<vmem>>, vector<1x128xf32>
    %3 = arith.truncf %0 : vector<8x128xf32> to vector<8x128xbf16>
    %cst = arith.constant dense<0.000000e+00> : vector<8x128xf32>
    %4 = tpu.matmul %3, %1, %cst {dimension_numbers = #tpu.dot_dimension_numbers<[1], [0], [0], [1], [0, 0, 1, 1], [], []>} : vector<8x128xbf16>, vector<128x128xbf16>, vector<8x128xf32> -> vector<8x128xf32>
    %5 = vector.broadcast %2 : vector<1x128xf32> to vector<8x128xf32>
    %6 = arith.addf %4, %5 : vector<8x128xf32>
    %cst_5 = arith.constant 0.000000e+00 : f32
    %7 = vector.broadcast %cst_5 : f32 to vector<8x128xf32>
    %8 = arith.maximumf %6, %7 : vector<8x128xf32>
    %c0_6 = arith.constant 0 : index
    %c0_7 = arith.constant 0 : index
    %9 = vector.load %arg5[%c0_6, %c0_7] : memref<128x128xbf16, #tpu.memory_space<vmem>>, vector<128x128xbf16>
    %c0_8 = arith.constant 0 : index
    %c0_9 = arith.constant 0 : index
    %10 = vector.load %arg6[%c0_8, %c0_9] : memref<1x128xf32, #tpu.memory_space<vmem>>, vector<1x128xf32>
    %11 = arith.truncf %8 : vector<8x128xf32> to vector<8x128xbf16>
    %cst_10 = arith.constant dense<0.000000e+00> : vector<8x128xf32>
    %12 = tpu.matmul %11, %9, %cst_10 {dimension_numbers = #tpu.dot_dimension_numbers<[1], [0], [0], [1], [0, 0, 1, 1], [], []>} : vector<8x128xbf16>, vector<128x128xbf16>, vector<8x128xf32> -> vector<8x128xf32>
    %13 = vector.broadcast %10 : vector<1x128xf32> to vector<8x128xf32>
    %14 = arith.addf %12, %13 : vector<8x128xf32>
    %cst_11 = arith.constant 0.000000e+00 : f32
    %15 = vector.broadcast %cst_11 : f32 to vector<8x128xf32>
    %16 = arith.maximumf %14, %15 : vector<8x128xf32>
    %c0_12 = arith.constant 0 : index
    %c0_13 = arith.constant 0 : index
    %17 = vector.load %arg7[%c0_12, %c0_13] : memref<128x128xbf16, #tpu.memory_space<vmem>>, vector<128x128xbf16>
    %c0_14 = arith.constant 0 : index
    %c0_15 = arith.constant 0 : index
    %18 = vector.load %arg8[%c0_14, %c0_15] : memref<1x128xf32, #tpu.memory_space<vmem>>, vector<1x128xf32>
    %19 = arith.truncf %16 : vector<8x128xf32> to vector<8x128xbf16>
    %cst_16 = arith.constant dense<0.000000e+00> : vector<8x128xf32>
    %20 = tpu.matmul %19, %17, %cst_16 {dimension_numbers = #tpu.dot_dimension_numbers<[1], [0], [0], [1], [0, 0, 1, 1], [], []>} : vector<8x128xbf16>, vector<128x128xbf16>, vector<8x128xf32> -> vector<8x128xf32>
    %21 = vector.broadcast %18 : vector<1x128xf32> to vector<8x128xf32>
    %22 = arith.addf %20, %21 : vector<8x128xf32>
    %cst_17 = arith.constant 0.000000e+00 : f32
    %23 = vector.broadcast %cst_17 : f32 to vector<8x128xf32>
    %24 = arith.maximumf %22, %23 : vector<8x128xf32>
    %25 = arith.truncf %24 : vector<8x128xf32> to vector<8x128xbf16>
    %c0_18 = arith.constant 0 : index
    %c0_19 = arith.constant 0 : index
    %26 = vector.load %arg9[%c0_18, %c0_19] : memref<128x256xbf16, #tpu.memory_space<vmem>>, vector<128x256xbf16>
    %cst_20 = arith.constant dense<0.000000e+00> : vector<8x256xf32>
    %27 = tpu.matmul %25, %26, %cst_20 {dimension_numbers = #tpu.dot_dimension_numbers<[1], [0], [0], [1], [0, 0, 1, 1], [], []>} : vector<8x128xbf16>, vector<128x256xbf16>, vector<8x256xf32> -> vector<8x256xf32>
    %c0_21 = arith.constant 0 : index
    %c0_22 = arith.constant 0 : index
    %28 = vector.load %arg10[%c0_21, %c0_22] : memref<1x256xf32, #tpu.memory_space<vmem>>, vector<1x256xf32>
    %29 = vector.broadcast %28 : vector<1x256xf32> to vector<8x256xf32>
    %30 = arith.addf %27, %29 : vector<8x256xf32>
    %31 = vector.extract_strided_slice %30 {offsets = [0, 0], sizes = [8, 128], strides = [1, 1]} : vector<8x256xf32> to vector<8x128xf32>
    %32 = vector.extract_strided_slice %30 {offsets = [0, 128], sizes = [8, 128], strides = [1, 1]} : vector<8x256xf32> to vector<8x128xf32>
    %cst_23 = arith.constant 5.000000e-01 : f32
    %33 = vector.broadcast %cst_23 : f32 to vector<8x128xf32>
    %34 = arith.mulf %33, %32 : vector<8x128xf32>
    %35 = math.exp %34 : vector<8x128xf32>
    %c0_24 = arith.constant 0 : index
    %c0_25 = arith.constant 0 : index
    %36 = vector.load %arg2[%c0_24, %c0_25] : memref<8x128xf32, #tpu.memory_space<vmem>>, vector<8x128xf32>
    %37 = arith.mulf %35, %36 : vector<8x128xf32>
    %38 = arith.addf %31, %37 : vector<8x128xf32>
    %c0_26 = arith.constant 0 : index
    %c0_27 = arith.constant 0 : index
    %39 = vector.load %arg17[%c0_26, %c0_27] : memref<8x128xf32, #tpu.memory_space<vmem>>, vector<8x128xf32>
    tpu.vector_store %arg17[%c0_26, %c0_27], %31 {strides = array<i32>} : memref<8x128xf32, #tpu.memory_space<vmem>>, vector<8x128xf32>,
    %c0_28 = arith.constant 0 : index
    %c0_29 = arith.constant 0 : index
    %40 = vector.load %arg18[%c0_28, %c0_29] : memref<8x128xf32, #tpu.memory_space<vmem>>, vector<8x128xf32>
    tpu.vector_store %arg18[%c0_28, %c0_29], %32 {strides = array<i32>} : memref<8x128xf32, #tpu.memory_space<vmem>>, vector<8x128xf32>,
    %c0_30 = arith.constant 0 : index
    %c0_31 = arith.constant 0 : index
    %41 = vector.load %arg19[%c0_30, %c0_31] : memref<8x128xf32, #tpu.memory_space<vmem>>, vector<8x128xf32>
    tpu.vector_store %arg19[%c0_30, %c0_31], %38 {strides = array<i32>} : memref<8x128xf32, #tpu.memory_space<vmem>>, vector<8x128xf32>,
    %c0_32 = arith.constant 0 : index
    %c0_33 = arith.constant 0 : index
    %42 = vector.load %arg11[%c0_32, %c0_33] : memref<128x128xbf16, #tpu.memory_space<vmem>>, vector<128x128xbf16>
    %c0_34 = arith.constant 0 : index
    %c0_35 = arith.constant 0 : index
    %43 = vector.load %arg12[%c0_34, %c0_35] : memref<1x128xf32, #tpu.memory_space<vmem>>, vector<1x128xf32>
    %44 = arith.truncf %38 : vector<8x128xf32> to vector<8x128xbf16>
    %cst_36 = arith.constant dense<0.000000e+00> : vector<8x128xf32>
    %45 = tpu.matmul %44, %42, %cst_36 {dimension_numbers = #tpu.dot_dimension_numbers<[1], [0], [0], [1], [0, 0, 1, 1], [], []>} : vector<8x128xbf16>, vector<128x128xbf16>, vector<8x128xf32> -> vector<8x128xf32>
    %46 = vector.broadcast %43 : vector<1x128xf32> to vector<8x128xf32>
    %47 = arith.addf %45, %46 : vector<8x128xf32>
    %cst_37 = arith.constant 0.000000e+00 : f32
    %48 = vector.broadcast %cst_37 : f32 to vector<8x128xf32>
    %49 = arith.maximumf %47, %48 : vector<8x128xf32>
    %c0_38 = arith.constant 0 : index
    %c0_39 = arith.constant 0 : index
    %50 = vector.load %arg13[%c0_38, %c0_39] : memref<128x128xbf16, #tpu.memory_space<vmem>>, vector<128x128xbf16>
    %c0_40 = arith.constant 0 : index
    %c0_41 = arith.constant 0 : index
    %51 = vector.load %arg14[%c0_40, %c0_41] : memref<1x128xf32, #tpu.memory_space<vmem>>, vector<1x128xf32>
    %52 = arith.truncf %49 : vector<8x128xf32> to vector<8x128xbf16>
    %cst_42 = arith.constant dense<0.000000e+00> : vector<8x128xf32>
    %53 = tpu.matmul %52, %50, %cst_42 {dimension_numbers = #tpu.dot_dimension_numbers<[1], [0], [0], [1], [0, 0, 1, 1], [], []>} : vector<8x128xbf16>, vector<128x128xbf16>, vector<8x128xf32> -> vector<8x128xf32>
    %54 = vector.broadcast %51 : vector<1x128xf32> to vector<8x128xf32>
    %55 = arith.addf %53, %54 : vector<8x128xf32>
    %cst_43 = arith.constant 0.000000e+00 : f32
    %56 = vector.broadcast %cst_43 : f32 to vector<8x128xf32>
    %57 = arith.maximumf %55, %56 : vector<8x128xf32>
    %c0_44 = arith.constant 0 : index
    %c0_45 = arith.constant 0 : index
    %58 = vector.load %arg15[%c0_44, %c0_45] : memref<128x128xbf16, #tpu.memory_space<vmem>>, vector<128x128xbf16>
    %c0_46 = arith.constant 0 : index
    %c0_47 = arith.constant 0 : index
    %59 = vector.load %arg16[%c0_46, %c0_47] : memref<1x128xf32, #tpu.memory_space<vmem>>, vector<1x128xf32>
    %60 = arith.truncf %57 : vector<8x128xf32> to vector<8x128xbf16>
    %cst_48 = arith.constant dense<0.000000e+00> : vector<8x128xf32>
    %61 = tpu.matmul %60, %58, %cst_48 {dimension_numbers = #tpu.dot_dimension_numbers<[1], [0], [0], [1], [0, 0, 1, 1], [], []>} : vector<8x128xbf16>, vector<128x128xbf16>, vector<8x128xf32> -> vector<8x128xf32>
    %62 = vector.broadcast %59 : vector<1x128xf32> to vector<8x128xf32>
    %63 = arith.addf %61, %62 : vector<8x128xf32>
    %cst_49 = arith.constant 0.000000e+00 : f32
    %64 = vector.broadcast %cst_49 : f32 to vector<8x128xf32>
    %65 = arith.maximumf %63, %64 : vector<8x128xf32>
    %c0_50 = arith.constant 0 : index
    %c0_51 = arith.constant 0 : index
    %66 = vector.load %arg20[%c0_50, %c0_51] : memref<8x128xf32, #tpu.memory_space<vmem>>, vector<8x128xf32>
    tpu.vector_store %arg20[%c0_50, %c0_51], %65 {strides = array<i32>} : memref<8x128xf32, #tpu.memory_space<vmem>>, vector<8x128xf32>,
    return
  }
  func.func @transform_0(%arg0: i32) -> (i32, i32) {
    %c0_i32 = arith.constant 0 : i32
    %c0_i32_0 = arith.constant 0 : i32
    return %arg0, %c0_i32 : i32, i32
  }
  func.func @transform_1(%arg0: i32) -> (i32, i32) {
    %c0_i32 = arith.constant 0 : i32
    %c0_i32_0 = arith.constant 0 : i32
    return %arg0, %c0_i32 : i32, i32
  }
  func.func @transform_2(%arg0: i32) -> (i32, i32) {
    %c0_i32 = arith.constant 0 : i32
    %c0_i32_0 = arith.constant 0 : i32
    %c0_i32_1 = arith.constant 0 : i32
    return %c0_i32, %c0_i32_0 : i32, i32
  }
  func.func @transform_3(%arg0: i32) -> (i32, i32) {
    %c0_i32 = arith.constant 0 : i32
    %c0_i32_0 = arith.constant 0 : i32
    %c0_i32_1 = arith.constant 0 : i32
    return %c0_i32, %c0_i32_0 : i32, i32
  }
  func.func @transform_4(%arg0: i32) -> (i32, i32) {
    %c0_i32 = arith.constant 0 : i32
    %c0_i32_0 = arith.constant 0 : i32
    %c0_i32_1 = arith.constant 0 : i32
    return %c0_i32, %c0_i32_0 : i32, i32
  }
  func.func @transform_5(%arg0: i32) -> (i32, i32) {
    %c0_i32 = arith.constant 0 : i32
    %c0_i32_0 = arith.constant 0 : i32
    %c0_i32_1 = arith.constant 0 : i32
    return %c0_i32, %c0_i32_0 : i32, i32
  }
  func.func @transform_6(%arg0: i32) -> (i32, i32) {
    %c0_i32 = arith.constant 0 : i32
    %c0_i32_0 = arith.constant 0 : i32
    %c0_i32_1 = arith.constant 0 : i32
    return %c0_i32, %c0_i32_0 : i32, i32
  }
  func.func @transform_7(%arg0: i32) -> (i32, i32) {
    %c0_i32 = arith.constant 0 : i32
    %c0_i32_0 = arith.constant 0 : i32
    %c0_i32_1 = arith.constant 0 : i32
    return %c0_i32, %c0_i32_0 : i32, i32
  }
  func.func @transform_8(%arg0: i32) -> (i32, i32) {
    %c0_i32 = arith.constant 0 : i32
    %c0_i32_0 = arith.constant 0 : i32
    %c0_i32_1 = arith.constant 0 : i32
    return %c0_i32, %c0_i32_0 : i32, i32
  }
  func.func @transform_9(%arg0: i32) -> (i32, i32) {
    %c0_i32 = arith.constant 0 : i32
    %c0_i32_0 = arith.constant 0 : i32
    %c0_i32_1 = arith.constant 0 : i32
    return %c0_i32, %c0_i32_0 : i32, i32
  }
  func.func @transform_10(%arg0: i32) -> (i32, i32) {
    %c0_i32 = arith.constant 0 : i32
    %c0_i32_0 = arith.constant 0 : i32
    %c0_i32_1 = arith.constant 0 : i32
    return %c0_i32, %c0_i32_0 : i32, i32
  }
  func.func @transform_11(%arg0: i32) -> (i32, i32) {
    %c0_i32 = arith.constant 0 : i32
    %c0_i32_0 = arith.constant 0 : i32
    %c0_i32_1 = arith.constant 0 : i32
    return %c0_i32, %c0_i32_0 : i32, i32
  }
  func.func @transform_12(%arg0: i32) -> (i32, i32) {
    %c0_i32 = arith.constant 0 : i32
    %c0_i32_0 = arith.constant 0 : i32
    %c0_i32_1 = arith.constant 0 : i32
    return %c0_i32, %c0_i32_0 : i32, i32
  }
  func.func @transform_13(%arg0: i32) -> (i32, i32) {
    %c0_i32 = arith.constant 0 : i32
    %c0_i32_0 = arith.constant 0 : i32
    %c0_i32_1 = arith.constant 0 : i32
    return %c0_i32, %c0_i32_0 : i32, i32
  }
  func.func @transform_14(%arg0: i32) -> (i32, i32) {
    %c0_i32 = arith.constant 0 : i32
    %c0_i32_0 = arith.constant 0 : i32
    %c0_i32_1 = arith.constant 0 : i32
    return %c0_i32, %c0_i32_0 : i32, i32
  }
  func.func @transform_15(%arg0: i32) -> (i32, i32) {
    %c0_i32 = arith.constant 0 : i32
    %c0_i32_0 = arith.constant 0 : i32
    %c0_i32_1 = arith.constant 0 : i32
    return %c0_i32, %c0_i32_0 : i32, i32
  }
  func.func @transform_16(%arg0: i32) -> (i32, i32) {
    %c0_i32 = arith.constant 0 : i32
    %c0_i32_0 = arith.constant 0 : i32
    return %arg0, %c0_i32 : i32, i32
  }
  func.func @transform_17(%arg0: i32) -> (i32, i32) {
    %c0_i32 = arith.constant 0 : i32
    %c0_i32_0 = arith.constant 0 : i32
    return %arg0, %c0_i32 : i32, i32
  }
  func.func @transform_18(%arg0: i32) -> (i32, i32) {
    %c0_i32 = arith.constant 0 : i32
    %c0_i32_0 = arith.constant 0 : i32
    return %arg0, %c0_i32 : i32, i32
  }
  func.func @transform_19(%arg0: i32) -> (i32, i32) {
    %c0_i32 = arith.constant 0 : i32
    %c0_i32_0 = arith.constant 0 : i32
    return %arg0, %c0_i32 : i32, i32
  }
}

module attributes {stable_mosaic.version = 11 : i64} {
  func.func @_vae_kernel(%arg0: i32, %arg1: memref<8x128xf32, #tpu.memory_space<vmem>>, %arg2: memref<8x128xf32, #tpu.memory_space<vmem>>, %arg3: memref<128x128xbf16, #tpu.memory_space<vmem>>, %arg4: memref<1x128xf32, #tpu.memory_space<vmem>>, %arg5: memref<128x128xbf16, #tpu.memory_space<vmem>>, %arg6: memref<1x128xf32, #tpu.memory_space<vmem>>, %arg7: memref<128x128xbf16, #tpu.memory_space<vmem>>, %arg8: memref<1x128xf32, #tpu.memory_space<vmem>>, %arg9: memref<128x256xbf16, #tpu.memory_space<vmem>>, %arg10: memref<1x256xf32, #tpu.memory_space<vmem>>, %arg11: memref<128x128xbf16, #tpu.memory_space<vmem>>, %arg12: memref<1x128xf32, #tpu.memory_space<vmem>>, %arg13: memref<128x128xbf16, #tpu.memory_space<vmem>>, %arg14: memref<1x128xf32, #tpu.memory_space<vmem>>, %arg15: memref<128x128xbf16, #tpu.memory_space<vmem>>, %arg16: memref<1x128xf32, #tpu.memory_space<vmem>>, %arg17: memref<8x128xf32, #tpu.memory_space<vmem>>, %arg18: memref<8x128xf32, #tpu.memory_space<vmem>>, %arg19: memref<8x128xf32, #tpu.memory_space<vmem>>, %arg20: memref<8x128xf32, #tpu.memory_space<vmem>>) attributes {dimension_semantics = [#tpu.dimension_semantics<parallel>], iteration_bounds = array<i64: 1>, scalar_prefetch = 0 : i64, scratch_operands = 0 : i64, tpu.core_type = #tpu.core_type<tc>, window_params = [{transform_indices = @transform_0, window_bounds = array<i64: 8, 128>}, {transform_indices = @transform_1, window_bounds = array<i64: 8, 128>}, {pipeline_mode = #tpu.pipeline_mode<synchronous>, transform_indices = @transform_2, window_bounds = array<i64: 128, 128>}, {pipeline_mode = #tpu.pipeline_mode<synchronous>, transform_indices = @transform_3, window_bounds = array<i64: 1, 128>}, {pipeline_mode = #tpu.pipeline_mode<synchronous>, transform_indices = @transform_4, window_bounds = array<i64: 128, 128>}, {pipeline_mode = #tpu.pipeline_mode<synchronous>, transform_indices = @transform_5, window_bounds = array<i64: 1, 128>}, {pipeline_mode = #tpu.pipeline_mode<synchronous>, transform_indices = @transform_6, window_bounds = array<i64: 128, 128>}, {pipeline_mode = #tpu.pipeline_mode<synchronous>, transform_indices = @transform_7, window_bounds = array<i64: 1, 128>}, {pipeline_mode = #tpu.pipeline_mode<synchronous>, transform_indices = @transform_8, window_bounds = array<i64: 128, 256>}, {pipeline_mode = #tpu.pipeline_mode<synchronous>, transform_indices = @transform_9, window_bounds = array<i64: 1, 256>}, {pipeline_mode = #tpu.pipeline_mode<synchronous>, transform_indices = @transform_10, window_bounds = array<i64: 128, 128>}, {pipeline_mode = #tpu.pipeline_mode<synchronous>, transform_indices = @transform_11, window_bounds = array<i64: 1, 128>}, {pipeline_mode = #tpu.pipeline_mode<synchronous>, transform_indices = @transform_12, window_bounds = array<i64: 128, 128>}, {pipeline_mode = #tpu.pipeline_mode<synchronous>, transform_indices = @transform_13, window_bounds = array<i64: 1, 128>}, {pipeline_mode = #tpu.pipeline_mode<synchronous>, transform_indices = @transform_14, window_bounds = array<i64: 128, 128>}, {pipeline_mode = #tpu.pipeline_mode<synchronous>, transform_indices = @transform_15, window_bounds = array<i64: 1, 128>}, {transform_indices = @transform_16, window_bounds = array<i64: 8, 128>}, {transform_indices = @transform_17, window_bounds = array<i64: 8, 128>}, {transform_indices = @transform_18, window_bounds = array<i64: 8, 128>}, {transform_indices = @transform_19, window_bounds = array<i64: 8, 128>}]} {
    %c0 = arith.constant 0 : index
    %c0_0 = arith.constant 0 : index
    %0 = vector.load %arg1[%c0, %c0_0] : memref<8x128xf32, #tpu.memory_space<vmem>>, vector<8x128xf32>
    %c0_1 = arith.constant 0 : index
    %c0_2 = arith.constant 0 : index
    %1 = vector.load %arg3[%c0_1, %c0_2] : memref<128x128xbf16, #tpu.memory_space<vmem>>, vector<128x128xbf16>
    %c0_3 = arith.constant 0 : index
    %c0_4 = arith.constant 0 : index
    %2 = vector.load %arg4[%c0_3, %c0_4] : memref<1x128xf32, #tpu.memory_space<vmem>>, vector<1x128xf32>
    %3 = arith.truncf %0 : vector<8x128xf32> to vector<8x128xbf16>
    %cst = arith.constant dense<0.000000e+00> : vector<8x128xf32>
    %4 = tpu.matmul %3, %1, %cst {dimension_numbers = #tpu.dot_dimension_numbers<[1], [0], [0], [1], [0, 0, 1, 1], [], []>} : vector<8x128xbf16>, vector<128x128xbf16>, vector<8x128xf32> -> vector<8x128xf32>
    %5 = vector.broadcast %2 : vector<1x128xf32> to vector<8x128xf32>
    %6 = arith.addf %4, %5 : vector<8x128xf32>
    %cst_5 = arith.constant 0.000000e+00 : f32
    %7 = vector.broadcast %cst_5 : f32 to vector<8x128xf32>
    %8 = arith.maximumf %6, %7 : vector<8x128xf32>
    %c0_6 = arith.constant 0 : index
    %c0_7 = arith.constant 0 : index
    %9 = vector.load %arg5[%c0_6, %c0_7] : memref<128x128xbf16, #tpu.memory_space<vmem>>, vector<128x128xbf16>
    %c0_8 = arith.constant 0 : index
    %c0_9 = arith.constant 0 : index
    %10 = vector.load %arg6[%c0_8, %c0_9] : memref<1x128xf32, #tpu.memory_space<vmem>>, vector<1x128xf32>
    %11 = arith.truncf %8 : vector<8x128xf32> to vector<8x128xbf16>
    %cst_10 = arith.constant dense<0.000000e+00> : vector<8x128xf32>
    %12 = tpu.matmul %11, %9, %cst_10 {dimension_numbers = #tpu.dot_dimension_numbers<[1], [0], [0], [1], [0, 0, 1, 1], [], []>} : vector<8x128xbf16>, vector<128x128xbf16>, vector<8x128xf32> -> vector<8x128xf32>
    %13 = vector.broadcast %10 : vector<1x128xf32> to vector<8x128xf32>
    %14 = arith.addf %12, %13 : vector<8x128xf32>
    %cst_11 = arith.constant 0.000000e+00 : f32
    %15 = vector.broadcast %cst_11 : f32 to vector<8x128xf32>
    %16 = arith.maximumf %14, %15 : vector<8x128xf32>
    %c0_12 = arith.constant 0 : index
    %c0_13 = arith.constant 0 : index
    %17 = vector.load %arg7[%c0_12, %c0_13] : memref<128x128xbf16, #tpu.memory_space<vmem>>, vector<128x128xbf16>
    %c0_14 = arith.constant 0 : index
    %c0_15 = arith.constant 0 : index
    %18 = vector.load %arg8[%c0_14, %c0_15] : memref<1x128xf32, #tpu.memory_space<vmem>>, vector<1x128xf32>
    %19 = arith.truncf %16 : vector<8x128xf32> to vector<8x128xbf16>
    %cst_16 = arith.constant dense<0.000000e+00> : vector<8x128xf32>
    %20 = tpu.matmul %19, %17, %cst_16 {dimension_numbers = #tpu.dot_dimension_numbers<[1], [0], [0], [1], [0, 0, 1, 1], [], []>} : vector<8x128xbf16>, vector<128x128xbf16>, vector<8x128xf32> -> vector<8x128xf32>
    %21 = vector.broadcast %18 : vector<1x128xf32> to vector<8x128xf32>
    %22 = arith.addf %20, %21 : vector<8x128xf32>
    %cst_17 = arith.constant 0.000000e+00 : f32
    %23 = vector.broadcast %cst_17 : f32 to vector<8x128xf32>
    %24 = arith.maximumf %22, %23 : vector<8x128xf32>
    %25 = arith.truncf %24 : vector<8x128xf32> to vector<8x128xbf16>
    %c0_18 = arith.constant 0 : index
    %c0_19 = arith.constant 0 : index
    %26 = vector.load %arg9[%c0_18, %c0_19] : memref<128x256xbf16, #tpu.memory_space<vmem>>, vector<128x256xbf16>
    %cst_20 = arith.constant dense<0.000000e+00> : vector<8x256xf32>
    %27 = tpu.matmul %25, %26, %cst_20 {dimension_numbers = #tpu.dot_dimension_numbers<[1], [0], [0], [1], [0, 0, 1, 1], [], []>} : vector<8x128xbf16>, vector<128x256xbf16>, vector<8x256xf32> -> vector<8x256xf32>
    %c0_21 = arith.constant 0 : index
    %c0_22 = arith.constant 0 : index
    %28 = vector.load %arg10[%c0_21, %c0_22] : memref<1x256xf32, #tpu.memory_space<vmem>>, vector<1x256xf32>
    %29 = vector.broadcast %28 : vector<1x256xf32> to vector<8x256xf32>
    %30 = arith.addf %27, %29 : vector<8x256xf32>
    %31 = vector.extract_strided_slice %30 {offsets = [0, 0], sizes = [8, 128], strides = [1, 1]} : vector<8x256xf32> to vector<8x128xf32>
    %32 = vector.extract_strided_slice %30 {offsets = [0, 128], sizes = [8, 128], strides = [1, 1]} : vector<8x256xf32> to vector<8x128xf32>
    %cst_23 = arith.constant 5.000000e-01 : f32
    %33 = vector.broadcast %cst_23 : f32 to vector<8x128xf32>
    %34 = arith.mulf %33, %32 : vector<8x128xf32>
    %35 = math.exp %34 : vector<8x128xf32>
    %c0_24 = arith.constant 0 : index
    %c0_25 = arith.constant 0 : index
    %36 = vector.load %arg2[%c0_24, %c0_25] : memref<8x128xf32, #tpu.memory_space<vmem>>, vector<8x128xf32>
    %37 = arith.mulf %35, %36 : vector<8x128xf32>
    %38 = arith.addf %31, %37 : vector<8x128xf32>
    %c0_26 = arith.constant 0 : index
    %c0_27 = arith.constant 0 : index
    %39 = vector.load %arg17[%c0_26, %c0_27] : memref<8x128xf32, #tpu.memory_space<vmem>>, vector<8x128xf32>
    tpu.vector_store %arg17[%c0_26, %c0_27], %31 {strides = array<i32>} : memref<8x128xf32, #tpu.memory_space<vmem>>, vector<8x128xf32>,
    %c0_28 = arith.constant 0 : index
    %c0_29 = arith.constant 0 : index
    %40 = vector.load %arg18[%c0_28, %c0_29] : memref<8x128xf32, #tpu.memory_space<vmem>>, vector<8x128xf32>
    tpu.vector_store %arg18[%c0_28, %c0_29], %32 {strides = array<i32>} : memref<8x128xf32, #tpu.memory_space<vmem>>, vector<8x128xf32>,
    %c0_30 = arith.constant 0 : index
    %c0_31 = arith.constant 0 : index
    %41 = vector.load %arg19[%c0_30, %c0_31] : memref<8x128xf32, #tpu.memory_space<vmem>>, vector<8x128xf32>
    tpu.vector_store %arg19[%c0_30, %c0_31], %38 {strides = array<i32>} : memref<8x128xf32, #tpu.memory_space<vmem>>, vector<8x128xf32>,
    %c0_32 = arith.constant 0 : index
    %c0_33 = arith.constant 0 : index
    %42 = vector.load %arg11[%c0_32, %c0_33] : memref<128x128xbf16, #tpu.memory_space<vmem>>, vector<128x128xbf16>
    %c0_34 = arith.constant 0 : index
    %c0_35 = arith.constant 0 : index
    %43 = vector.load %arg12[%c0_34, %c0_35] : memref<1x128xf32, #tpu.memory_space<vmem>>, vector<1x128xf32>
    %44 = arith.truncf %38 : vector<8x128xf32> to vector<8x128xbf16>
    %cst_36 = arith.constant dense<0.000000e+00> : vector<8x128xf32>
    %45 = tpu.matmul %44, %42, %cst_36 {dimension_numbers = #tpu.dot_dimension_numbers<[1], [0], [0], [1], [0, 0, 1, 1], [], []>} : vector<8x128xbf16>, vector<128x128xbf16>, vector<8x128xf32> -> vector<8x128xf32>
    %46 = vector.broadcast %43 : vector<1x128xf32> to vector<8x128xf32>
    %47 = arith.addf %45, %46 : vector<8x128xf32>
    %cst_37 = arith.constant 0.000000e+00 : f32
    %48 = vector.broadcast %cst_37 : f32 to vector<8x128xf32>
    %49 = arith.maximumf %47, %48 : vector<8x128xf32>
    %c0_38 = arith.constant 0 : index
    %c0_39 = arith.constant 0 : index
    %50 = vector.load %arg13[%c0_38, %c0_39] : memref<128x128xbf16, #tpu.memory_space<vmem>>, vector<128x128xbf16>
    %c0_40 = arith.constant 0 : index
    %c0_41 = arith.constant 0 : index
    %51 = vector.load %arg14[%c0_40, %c0_41] : memref<1x128xf32, #tpu.memory_space<vmem>>, vector<1x128xf32>
    %52 = arith.truncf %49 : vector<8x128xf32> to vector<8x128xbf16>
    %cst_42 = arith.constant dense<0.000000e+00> : vector<8x128xf32>
    %53 = tpu.matmul %52, %50, %cst_42 {dimension_numbers = #tpu.dot_dimension_numbers<[1], [0], [0], [1], [0, 0, 1, 1], [], []>} : vector<8x128xbf16>, vector<128x128xbf16>, vector<8x128xf32> -> vector<8x128xf32>
    %54 = vector.broadcast %51 : vector<1x128xf32> to vector<8x128xf32>
    %55 = arith.addf %53, %54 : vector<8x128xf32>
    %cst_43 = arith.constant 0.000000e+00 : f32
    %56 = vector.broadcast %cst_43 : f32 to vector<8x128xf32>
    %57 = arith.maximumf %55, %56 : vector<8x128xf32>
    %c0_44 = arith.constant 0 : index
    %c0_45 = arith.constant 0 : index
    %58 = vector.load %arg15[%c0_44, %c0_45] : memref<128x128xbf16, #tpu.memory_space<vmem>>, vector<128x128xbf16>
    %c0_46 = arith.constant 0 : index
    %c0_47 = arith.constant 0 : index
    %59 = vector.load %arg16[%c0_46, %c0_47] : memref<1x128xf32, #tpu.memory_space<vmem>>, vector<1x128xf32>
    %60 = arith.truncf %57 : vector<8x128xf32> to vector<8x128xbf16>
    %cst_48 = arith.constant dense<0.000000e+00> : vector<8x128xf32>
    %61 = tpu.matmul %60, %58, %cst_48 {dimension_numbers = #tpu.dot_dimension_numbers<[1], [0], [0], [1], [0, 0, 1, 1], [], []>} : vector<8x128xbf16>, vector<128x128xbf16>, vector<8x128xf32> -> vector<8x128xf32>
    %62 = vector.broadcast %59 : vector<1x128xf32> to vector<8x128xf32>
    %63 = arith.addf %61, %62 : vector<8x128xf32>
    %cst_49 = arith.constant 0.000000e+00 : f32
    %64 = vector.broadcast %cst_49 : f32 to vector<8x128xf32>
    %65 = arith.maximumf %63, %64 : vector<8x128xf32>
    %c0_50 = arith.constant 0 : index
    %c0_51 = arith.constant 0 : index
    %66 = vector.load %arg20[%c0_50, %c0_51] : memref<8x128xf32, #tpu.memory_space<vmem>>, vector<8x128xf32>
    tpu.vector_store %arg20[%c0_50, %c0_51], %65 {strides = array<i32>} : memref<8x128xf32, #tpu.memory_space<vmem>>, vector<8x128xf32>,
    return
  }
  func.func @transform_0(%arg0: i32) -> (i32, i32) {
    %c0_i32 = arith.constant 0 : i32
    %c0_i32_0 = arith.constant 0 : i32
    return %arg0, %c0_i32 : i32, i32
  }
  func.func @transform_1(%arg0: i32) -> (i32, i32) {
    %c0_i32 = arith.constant 0 : i32
    %c0_i32_0 = arith.constant 0 : i32
    return %arg0, %c0_i32 : i32, i32
  }
  func.func @transform_2(%arg0: i32) -> (i32, i32) {
    %c0_i32 = arith.constant 0 : i32
    %c0_i32_0 = arith.constant 0 : i32
    %c0_i32_1 = arith.constant 0 : i32
    return %c0_i32, %c0_i32_0 : i32, i32
  }
  func.func @transform_3(%arg0: i32) -> (i32, i32) {
    %c0_i32 = arith.constant 0 : i32
    %c0_i32_0 = arith.constant 0 : i32
    %c0_i32_1 = arith.constant 0 : i32
    return %c0_i32, %c0_i32_0 : i32, i32
  }
  func.func @transform_4(%arg0: i32) -> (i32, i32) {
    %c0_i32 = arith.constant 0 : i32
    %c0_i32_0 = arith.constant 0 : i32
    %c0_i32_1 = arith.constant 0 : i32
    return %c0_i32, %c0_i32_0 : i32, i32
  }
  func.func @transform_5(%arg0: i32) -> (i32, i32) {
    %c0_i32 = arith.constant 0 : i32
    %c0_i32_0 = arith.constant 0 : i32
    %c0_i32_1 = arith.constant 0 : i32
    return %c0_i32, %c0_i32_0 : i32, i32
  }
  func.func @transform_6(%arg0: i32) -> (i32, i32) {
    %c0_i32 = arith.constant 0 : i32
    %c0_i32_0 = arith.constant 0 : i32
    %c0_i32_1 = arith.constant 0 : i32
    return %c0_i32, %c0_i32_0 : i32, i32
  }
  func.func @transform_7(%arg0: i32) -> (i32, i32) {
    %c0_i32 = arith.constant 0 : i32
    %c0_i32_0 = arith.constant 0 : i32
    %c0_i32_1 = arith.constant 0 : i32
    return %c0_i32, %c0_i32_0 : i32, i32
  }
  func.func @transform_8(%arg0: i32) -> (i32, i32) {
    %c0_i32 = arith.constant 0 : i32
    %c0_i32_0 = arith.constant 0 : i32
    %c0_i32_1 = arith.constant 0 : i32
    return %c0_i32, %c0_i32_0 : i32, i32
  }
  func.func @transform_9(%arg0: i32) -> (i32, i32) {
    %c0_i32 = arith.constant 0 : i32
    %c0_i32_0 = arith.constant 0 : i32
    %c0_i32_1 = arith.constant 0 : i32
    return %c0_i32, %c0_i32_0 : i32, i32
  }
  func.func @transform_10(%arg0: i32) -> (i32, i32) {
    %c0_i32 = arith.constant 0 : i32
    %c0_i32_0 = arith.constant 0 : i32
    %c0_i32_1 = arith.constant 0 : i32
    return %c0_i32, %c0_i32_0 : i32, i32
  }
  func.func @transform_11(%arg0: i32) -> (i32, i32) {
    %c0_i32 = arith.constant 0 : i32
    %c0_i32_0 = arith.constant 0 : i32
    %c0_i32_1 = arith.constant 0 : i32
    return %c0_i32, %c0_i32_0 : i32, i32
  }
  func.func @transform_12(%arg0: i32) -> (i32, i32) {
    %c0_i32 = arith.constant 0 : i32
    %c0_i32_0 = arith.constant 0 : i32
    %c0_i32_1 = arith.constant 0 : i32
    return %c0_i32, %c0_i32_0 : i32, i32
  }
  func.func @transform_13(%arg0: i32) -> (i32, i32) {
    %c0_i32 = arith.constant 0 : i32
    %c0_i32_0 = arith.constant 0 : i32
    %c0_i32_1 = arith.constant 0 : i32
    return %c0_i32, %c0_i32_0 : i32, i32
  }
  func.func @transform_14(%arg0: i32) -> (i32, i32) {
    %c0_i32 = arith.constant 0 : i32
    %c0_i32_0 = arith.constant 0 : i32
    %c0_i32_1 = arith.constant 0 : i32
    return %c0_i32, %c0_i32_0 : i32, i32
  }
  func.func @transform_15(%arg0: i32) -> (i32, i32) {
    %c0_i32 = arith.constant 0 : i32
    %c0_i32_0 = arith.constant 0 : i32
    %c0_i32_1 = arith.constant 0 : i32
    return %c0_i32, %c0_i32_0 : i32, i32
  }
  func.func @transform_16(%arg0: i32) -> (i32, i32) {
    %c0_i32 = arith.constant 0 : i32
    %c0_i32_0 = arith.constant 0 : i32
    return %arg0, %c0_i32 : i32, i32
  }
  func.func @transform_17(%arg0: i32) -> (i32, i32) {
    %c0_i32 = arith.constant 0 : i32
    %c0_i32_0 = arith.constant 0 : i32
    return %arg0, %c0_i32 : i32, i32
  }
  func.func @transform_18(%arg0: i32) -> (i32, i32) {
    %c0_i32 = arith.constant 0 : i32
    %c0_i32_0 = arith.constant 0 : i32
    return %arg0, %c0_i32 : i32, i32
  }
  func.func @transform_19(%arg0: i32) -> (i32, i32) {
    %c0_i32 = arith.constant 0 : i32
    %c0_i32_0 = arith.constant 0 : i32
    return %arg0, %c0_i32 : i32, i32
  }
}

</mosaic_0001>

<bundles_post_ra>
// kernel: _vae_forward_impl.1
= control target key start
LH: loop header
LB: loop body
LE: loop exit
PB: predicated region body
PF: predicated region fallthrough
CT: control target
= control target key end

     0   :  { %s1814_s0 = inlined_call_operand.vmem [shape: f32[8,128], index: 0, kind: input, shape index: {}]   ;;  %s1815_s1 = inlined_call_operand.vmem [shape: f32[8,128], index: 1, kind: input, shape index: {}]   ;;  %s1816_s2 = inlined_call_operand.hbm [shape: bf16[128,128], index: 2, kind: input, shape index: {}]   ;;  %s1817_s3 = inlined_call_operand.vmem [shape: f32[1,128], index: 3, kind: input, shape index: {}]   ;;  %s1818_s4 = inlined_call_operand.hbm [shape: bf16[128,128], index: 4, kind: input, shape index: {}]   ;;  %s1819_s5 = inlined_call_operand.vmem [shape: f32[1,128], index: 5, kind: input, shape index: {}]   ;;  %s1820_s6 = inlined_call_operand.hbm [shape: bf16[128,128], index: 6, kind: input, shape index: {}]   ;;  %s1821_s7 = inlined_call_operand.vmem [shape: f32[1,128], index: 7, kind: input, shape index: {}]   ;;  %s1822_s8 = inlined_call_operand.hbm [shape: bf16[128,256], index: 8, kind: input, shape index: {}]   ;;  %s1823_s9 = inlined_call_operand.vmem [shape: f32[1,256], index: 9, kind: input, shape index: {}]   ;;  %s1824_s10 = inlined_call_operand.hbm [shape: bf16[128,128], index: 10, kind: input, shape index: {}]   ;;  %s1825_s11 = inlined_call_operand.vmem [shape: f32[1,128], index: 11, kind: input, shape index: {}]   ;;  %s1826_s12 = inlined_call_operand.hbm [shape: bf16[128,128], index: 12, kind: input, shape index: {}]   ;;  %s1827_s13 = inlined_call_operand.vmem [shape: f32[1,128], index: 13, kind: input, shape index: {}]   ;;  %s1828_s14 = inlined_call_operand.vmem [shape: bf16[128,128], index: 14, kind: input, shape index: {}]   ;;  %s1829_s15 = inlined_call_operand.vmem [shape: f32[1,128], index: 15, kind: input, shape index: {}]   ;;  %s1830_s16 = inlined_call_operand.vmem [shape: f32[8,128], index: 16, kind: output, shape index: {0}]   ;;  %s1831_s17 = inlined_call_operand.vmem [shape: f32[8,128], index: 17, kind: output, shape index: {1}]   ;;  %s1832_s18 = inlined_call_operand.vmem [shape: f32[8,128], index: 18, kind: output, shape index: {2}]   ;;  %s1833_s19 = inlined_call_operand.vmem [shape: f32[8,128], index: 19, kind: output, shape index: {3}]  }
   0x1   :  { %1839 = sst [smem:[#allocation16_spill]] %s1814_s0 }
   0x2   :  { %1840 = sst [smem:[#allocation17_spill]] %s1815_s1 }
   0x3   :  { %1841 = sst [smem:[#allocation18_spill]] %s1816_s2 }
   0x4   :  { %1842 = sst [smem:[#allocation19_spill]] %s1817_s3 }
   0x5   :  { %1843 = sst [smem:[#allocation20_spill]] %s1833_s19 }
   0x6   :  { %25 = vsyncpa [#allocation3], 0 }
   0x7   :  { %26 = vsyncpa [#allocation5], 0 }
   0x8   :  { %27 = vsyncpa [#allocation8], 0 }
   0x9   :  { %28 = vsyncpa [#allocation11], 0  ;;  %s1470_s0 = smov [#allocation4]   ;;  %s1471_s20 = smov [#allocation7]  }
   0xa   :  { %s52_s30 = sshll.u32 %s1470_s0, 4  ;;  %s80_s21 = sshll.u32 %s1471_s20, 4  ;;  %s53_s30 = int_to_ptr.vmem [resolvable:$true] %s52_s30  ;;  %s1583_s21 = int_to_ptr.vmem [resolvable:$true] %s80_s21 }
   0xb   :  { %s1330_s2 = scalar_lea.hbm %s1818_s4, 1024 }
   0xc   :  { %p1331_p0 = scmp.ne.s32.totalorder %s1818_s4, %s1330_s2  ;;  %p1334_p1 = scmp.lt.u32.totalorder %s1330_s2, %s1818_s4 }
   0xe   :  { %p1336_p2 = pnand %p1334_p1, %p1331_p0 }
  0x10   :  { %1339 = shalt.err (!%p1336_p2)
}
  0x11   :  { %s1340_s26 = scalar_lea.vmem %s53_s30, 1024  ;;  %p1345_p4 = scmp.lt.s32.totalorder %s53_s30, %s53_s30 }
  0x12   :  { %p1341_p3 = scmp.ne.s32.totalorder %s53_s30, %s1340_s26  ;;  %p1346_p5 = scmp.lt.s32.totalorder %s1340_s26, %s1340_s26 }
  0x14   :  { %p1347_p6 = por %p1346_p5, %p1345_p4 }
  0x16   :  { %p1348_p7 = pnand %p1347_p6, %p1341_p3 }
  0x18   :  { %1351 = shalt.err (!%p1348_p7)
}
  0x19   :  { %s1835_s27 = smov 64   ;;  %s1837_s28 = smov 4  }
  0x1a   :  { %58 = dma.hbm_to_vmem [thread:$0]  %s1818_s4, 1024, %s53_s30, [#allocation5], %s1835_s27, %s1835_s27, %s1837_s28  }
  0x1b   :  { %s1352_s22 = scalar_lea.hbm %s1822_s8, 2048 }
  0x1c   :  { %p1353_p8 = scmp.ne.s32.totalorder %s1822_s8, %s1352_s22  ;;  %p1356_p9 = scmp.lt.u32.totalorder %s1352_s22, %s1822_s8 }
  0x1e   :  { %p1358_p10 = pnand %p1356_p9, %p1353_p8 }
  0x20   :  { %1361 = shalt.err (!%p1358_p10)
}
  0x21   :  { %s1362_s3 = scalar_lea.vmem %s1583_s21, 2048  ;;  %p1367_p12 = scmp.lt.s32.totalorder %s1583_s21, %s1583_s21 }
  0x22   :  { %p1363_p11 = scmp.ne.s32.totalorder %s1583_s21, %s1362_s3  ;;  %p1368_p13 = scmp.lt.s32.totalorder %s1362_s3, %s1362_s3 }
  0x24   :  { %p1369_p0 = por %p1368_p13, %p1367_p12 }
  0x26   :  { %p1370_p1 = pnand %p1369_p0, %p1363_p11 }
  0x28   :  { %1373 = shalt.err (!%p1370_p1)
}
  0x29   :  { %s1474_s4 = smov 128   ;;  %s1475_s30 = smov 8  }
  0x2a   :  { %86 = dma.hbm_to_vmem [thread:$0]  %s1822_s8, 2048, %s1583_s21, [#allocation8], %s1474_s4, %s1474_s4, %s1475_s30  }
  0x2b   :  { %s1476_s0 = smov [#allocation2]   ;;  %s1477_s1 = smov [#allocation6]  }
  0x2c   :  { %s38_s20 = sshll.u32 %s1476_s0, 4  ;;  %s66_s22 = sshll.u32 %s1477_s1, 4  ;;  %s39_s20 = int_to_ptr.vmem [resolvable:$true] %s38_s20  ;;  %s1617_s22 = int_to_ptr.vmem [resolvable:$true] %s66_s22 }
  0x2d   :  { %s1844_s24 = sld [smem:[#allocation18_spill]] }
  0x33   :  { %s1374_s25 = scalar_lea.hbm %s1844_s24, 1024 }
  0x34   :  { %p1375_p2 = scmp.ne.s32.totalorder %s1844_s24, %s1374_s25  ;;  %p1378_p3 = scmp.lt.u32.totalorder %s1374_s25, %s1844_s24 }
  0x36   :  { %p1380_p4 = pnand %p1378_p3, %p1375_p2 }
  0x38   :  { %1383 = shalt.err (!%p1380_p4)
}
  0x39   :  { %s1384_s8 = scalar_lea.vmem %s39_s20, 1024  ;;  %p1389_p6 = scmp.lt.s32.totalorder %s39_s20, %s39_s20 }
  0x3a   :  { %p1385_p5 = scmp.ne.s32.totalorder %s39_s20, %s1384_s8  ;;  %p1390_p7 = scmp.lt.s32.totalorder %s1384_s8, %s1384_s8 }
  0x3c   :  { %p1391_p8 = por %p1390_p7, %p1389_p6 }
  0x3e   :  { %p1392_p9 = pnand %p1391_p8, %p1385_p5 }
  0x40   :  { %1395 = shalt.err (!%p1392_p9)
}
  0x41   :  { %s1845_s21 = smov 4   ;;  %s1846_s4 = smov 64  }
  0x42   :  { %44 = dma.hbm_to_vmem [thread:$0]  %s1844_s24, 1024, %s39_s20, [#allocation3], %s1846_s4, %s1846_s4, %s1845_s21  }
  0x43   :  { %s1396_s19 = scalar_lea.hbm %s1820_s6, 1024 }
  0x44   :  { %p1397_p10 = scmp.ne.s32.totalorder %s1820_s6, %s1396_s19  ;;  %p1400_p11 = scmp.lt.u32.totalorder %s1396_s19, %s1820_s6 }
  0x46   :  { %p1402_p12 = pnand %p1400_p11, %p1397_p10 }
  0x48   :  { %1405 = shalt.err (!%p1402_p12)
}
  0x49   :  { %s1406_s23 = scalar_lea.vmem %s1617_s22, 1024  ;;  %p1411_p0 = scmp.lt.s32.totalorder %s1617_s22, %s1617_s22 }
  0x4a   :  { %p1407_p13 = scmp.ne.s32.totalorder %s1617_s22, %s1406_s23  ;;  %p1412_p1 = scmp.lt.s32.totalorder %s1406_s23, %s1406_s23 }
  0x4c   :  { %p1413_p2 = por %p1412_p1, %p1411_p0 }
  0x4e   :  { %p1414_p3 = pnand %p1413_p2, %p1407_p13 }
  0x50   :  { %1417 = shalt.err (!%p1414_p3)
}
  0x51   :  { %72 = dma.hbm_to_vmem [thread:$0]  %s1820_s6, 1024, %s1617_s22, [#allocation5], %s1846_s4, %s1846_s4, %s1845_s21  }
  0x52   :  { %s1478_s25 = smov [#allocation9]   ;;  %s1479_s8 = smov [#allocation10]  }
  0x53   :  { %s94_s3 = sshll.u32 %s1478_s25, 4  ;;  %s108_s30 = sshll.u32 %s1479_s8, 4  ;;  %s95_s3 = int_to_ptr.vmem [resolvable:$true] %s94_s3  ;;  %s1654_s30 = int_to_ptr.vmem [resolvable:$true] %s108_s30 }
  0x54   :  { %s1418_s29 = scalar_lea.hbm %s1824_s10, 1024 }
  0x55   :  { %p1419_p4 = scmp.ne.s32.totalorder %s1824_s10, %s1418_s29  ;;  %p1422_p5 = scmp.lt.u32.totalorder %s1418_s29, %s1824_s10 }
  0x57   :  { %p1424_p6 = pnand %p1422_p5, %p1419_p4 }
  0x59   :  { %1427 = shalt.err (!%p1424_p6)
}
  0x5a   :  { %s1428_s6 = scalar_lea.vmem %s95_s3, 1024  ;;  %p1433_p8 = scmp.lt.s32.totalorder %s95_s3, %s95_s3 }
  0x5b   :  { %p1429_p7 = scmp.ne.s32.totalorder %s95_s3, %s1428_s6  ;;  %p1434_p9 = scmp.lt.s32.totalorder %s1428_s6, %s1428_s6 }
  0x5d   :  { %p1435_p10 = por %p1434_p9, %p1433_p8 }
  0x5f   :  { %p1436_p11 = pnand %p1435_p10, %p1429_p7 }
  0x61   :  { %1439 = shalt.err (!%p1436_p11)
}
  0x62   :  { %100 = dma.hbm_to_vmem [thread:$0]  %s1824_s10, 1024, %s95_s3, [#allocation8], %s1846_s4, %s1846_s4, %s1845_s21  }
  0x63   :  { %s1440_s24 = scalar_lea.hbm %s1826_s12, 1024 }
  0x64   :  { %p1441_p12 = scmp.ne.s32.totalorder %s1826_s12, %s1440_s24  ;;  %p1444_p13 = scmp.lt.u32.totalorder %s1440_s24, %s1826_s12 }
  0x66   :  { %p1446_p0 = pnand %p1444_p13, %p1441_p12 }
  0x68   :  { %1449 = shalt.err (!%p1446_p0)
}
  0x69   :  { %s1450_s29 = scalar_lea.vmem %s1654_s30, 1024  ;;  %p1455_p2 = scmp.lt.s32.totalorder %s1654_s30, %s1654_s30 }
  0x6a   :  { %p1451_p1 = scmp.ne.s32.totalorder %s1654_s30, %s1450_s29  ;;  %p1456_p3 = scmp.lt.s32.totalorder %s1450_s29, %s1450_s29 }
  0x6c   :  { %p1457_p4 = por %p1456_p3, %p1455_p2 }
  0x6e   :  { %p1458_p5 = pnand %p1457_p4, %p1451_p1 }
  0x70   :  { %1461 = shalt.err (!%p1458_p5)
}
  0x71   :  { %114 = dma.hbm_to_vmem [thread:$0]  %s1826_s12, 1024, %s1654_s30, [#allocation11], %s1846_s4, %s1846_s4, %s1845_s21  }
  0x72   :  { %1462 = dma.done.wait [#allocation3], 1024  }
  0x73   :  { %1463 = vsyncadd [#allocation3], 4294966272 }
  0x74   :  { %1464 = dma.done.wait [#allocation5], 2048  }
  0x75   :  { %1465 = vsyncadd [#allocation5], 4294965248 }
  0x76   :  { %1466 = dma.done.wait [#allocation8], 3072  }
  0x77   :  { %1467 = vsyncadd [#allocation8], 4294964224 }
  0x78   :  { %1468 = dma.done.wait [#allocation11], 1024  }
  0x79   :  { %1469 = vsyncadd [#allocation11], 4294966272  ;;  %v1480_v0 = vmov 0.0   ;;  %vm1481_vm0 = vmmov 0   ;;  %v1256_v1 = vld [vmem:[#allocation2] sm:$0xff]   ;;  %v1257_v2 = vld [vmem:[#allocation2 + $0x8] sm:$0xff]  }
  0x7a   :  { %1123 = vmatprep.subr.bf16.mxu0 %v1480_v0  ;;  %1139 = vmatprep.mubr.msk.bf16.mxu0 %vm1481_vm0, %v1480_v0  ;;  %v1258_v3 = vld [vmem:[#allocation2 + $0x10] sm:$0xff]   ;;  %v1264_v4 = vld [vmem:[#allocation4] sm:$0xff]   ;;  %v1259_v5 = vld [vmem:[#allocation2 + $0x18] sm:$0xff]   ;;  %s1847_s4 = sld [smem:[#allocation16_spill]]  ;;  %s1848_s28 = sld [smem:[#allocation19_spill]]  ;;  %v1482_v59 = vmov 0  }
  0x7b   :  { %1143 = vmatprep.subr.bf16.mxu1 %v1480_v0  ;;  %1159 = vmatprep.mubr.msk.bf16.mxu1 %vm1481_vm0, %v1480_v0  ;;  %v1265_v6 = vld [vmem:[#allocation4 + $0x8] sm:$0xff]   ;;  %v1260_v7 = vld [vmem:[#allocation2 + $0x20] sm:$0xff]   ;;  %v1266_v8 = vld [vmem:[#allocation4 + $0x10] sm:$0xff]   ;;  %s1849_s8 = sld [smem:[#allocation17_spill]]  ;;  %s1850_s24 = sld [smem:[#allocation20_spill]] }
  0x7c   :  { %1124 = vmatpush3.bf16.msra.mxu0 %v1256_v1  ;;  %1144 = vmatpush3.bf16.msra.mxu1 %v1264_v4  ;;  %v1261_v9 = vld [vmem:[#allocation2 + $0x28] sm:$0xff]   ;;  %v1267_v10 = vld [vmem:[#allocation4 + $0x18] sm:$0xff]   ;;  %v1262_v11 = vld [vmem:[#allocation2 + $0x30] sm:$0xff]  }
  0x7d   :  { %1125 = vmatprep.subr.bf16.mxu0 %v1480_v0  ;;  %1145 = vmatprep.subr.bf16.mxu1 %v1480_v0  ;;  %v1268_v12 = vld [vmem:[#allocation4 + $0x20] sm:$0xff]   ;;  %v1263_v13 = vld [vmem:[#allocation2 + $0x38] sm:$0xff]   ;;  %v1269_v15 = vld [vmem:[#allocation4 + $0x28] sm:$0xff]  }
  0x7e   :  { %v1270_v17 = vld [vmem:[#allocation4 + $0x30] sm:$0xff]   ;;  %v1271_v18 = vld [vmem:[#allocation4 + $0x38] sm:$0xff]   ;;  %v1272_v19 = vld [vmem:[#allocation6] sm:$0xff]  }
  0x7f   :  { %v1273_v20 = vld [vmem:[#allocation6 + $0x8] sm:$0xff]   ;;  %v1274_v21 = vld [vmem:[#allocation6 + $0x10] sm:$0xff]   ;;  %v1275_v22 = vld [vmem:[#allocation6 + $0x18] sm:$0xff]  }
  0x80   :  { %1126 = vmatpush3.bf16.msra.mxu0 %v1257_v2  ;;  %1146 = vmatpush3.bf16.msra.mxu1 %v1265_v6  ;;  %v140_v14 = vld [vmem:[%s1847_s4] sm:$0xff]  ;;  %v1276_v23 = vld [vmem:[#allocation6 + $0x20] sm:$0xff]   ;;  %v1277_v24 = vld [vmem:[#allocation6 + $0x28] sm:$0xff]  }
  0x81   :  { %1127 = vmatprep.subr.bf16.mxu0 %v1480_v0  ;;  %1147 = vmatprep.subr.bf16.mxu1 %v1480_v0  ;;  %v158_v16 = vpack.c.bf16 %v140_v14, %v140_v14  ;;  %v999_v25 = vld [vmem:[%s1848_s28] ss:$0 sm:$0xff]  ;;  %v1278_v33 = vld [vmem:[#allocation6 + $0x30] sm:$0xff]   ;;  %v1280_v35 = vld [vmem:[#allocation7] ss:$8 sps:$4 sm:$0xff]  }
  0x82   :  { %v1279_v34 = vld [vmem:[#allocation6 + $0x38] sm:$0xff]   ;;  %v1282_v36 = vld [vmem:[#allocation7 + $0x4] ss:$8 sps:$4 sm:$0xff]   ;;  %v1286_v40 = vld [vmem:[#allocation7 + $0x20] ss:$8 sps:$4 sm:$0xff]  }
  0x83   :  { %v1285_v37 = vld [vmem:[#allocation7 + $0x14] ss:$8 sps:$4 sm:$0xff]   ;;  %v1283_v38 = vld [vmem:[#allocation7 + $0x10] ss:$8 sps:$4 sm:$0xff]   ;;  %v1288_v39 = vld [vmem:[#allocation7 + $0x24] ss:$8 sps:$4 sm:$0xff]  }
  0x84   :  { %1128 = vmatpush3.bf16.msra.mxu0 %v1258_v3  ;;  %1148 = vmatpush3.bf16.msra.mxu1 %v1266_v8  ;;  %v1291_v41 = vld [vmem:[#allocation7 + $0x34] ss:$8 sps:$4 sm:$0xff]   ;;  %v1289_v42 = vld [vmem:[#allocation7 + $0x30] ss:$8 sps:$4 sm:$0xff]   ;;  %v1294_v43 = vld [vmem:[#allocation7 + $0x44] ss:$8 sps:$4 sm:$0xff]  }
  0x85   :  { %1129 = vmatprep.subr.bf16.mxu0 %v1480_v0  ;;  %1149 = vmatprep.subr.bf16.mxu1 %v1480_v0  ;;  %v1292_v44 = vld [vmem:[#allocation7 + $0x40] ss:$8 sps:$4 sm:$0xff]   ;;  %v1297_v45 = vld [vmem:[#allocation7 + $0x54] ss:$8 sps:$4 sm:$0xff]   ;;  %v1295_v46 = vld [vmem:[#allocation7 + $0x50] ss:$8 sps:$4 sm:$0xff]  }
  0x86   :  { %v1300_v47 = vld [vmem:[#allocation7 + $0x64] ss:$8 sps:$4 sm:$0xff]   ;;  %v1298_v48 = vld [vmem:[#allocation7 + $0x60] ss:$8 sps:$4 sm:$0xff]   ;;  %v1008_v49 = vld [vmem:[%s1819_s5] ss:$0 sm:$0xff] }
  0x87   :  { %v1303_v57 = vld [vmem:[#allocation7 + $0x74] ss:$8 sps:$4 sm:$0xff]   ;;  %v1301_v58 = vld [vmem:[#allocation7 + $0x70] ss:$8 sps:$4 sm:$0xff]   ;;  %v1304_v60 = vld [vmem:[#allocation9] sm:$0xff]  }
  0x88   :  { %1130 = vmatpush3.bf16.msra.mxu0 %v1259_v5  ;;  %1150 = vmatpush3.bf16.msra.mxu1 %v1267_v10  ;;  %v1305_v61 = vld [vmem:[#allocation9 + $0x8] sm:$0xff]   ;;  %v1017_v62 = vld [vmem:[%s1821_s7] ss:$0 sm:$0xff] }
  0x89   :  { %1131 = vmatprep.subr.bf16.mxu0 %v1480_v0  ;;  %1151 = vmatprep.subr.bf16.mxu1 %v1480_v0  ;;  %v1307_v8 = vld [vmem:[#allocation9 + $0x18] sm:$0xff]   ;;  %v1309_v10 = vld [vmem:[#allocation9 + $0x28] sm:$0xff]  }
  0x8a   :  { %v1313_v14 = vld [vmem:[#allocation10 + $0x8] sm:$0xff]  }
  0x8c   :  { %1132 = vmatpush3.bf16.msra.mxu0 %v1260_v7  ;;  %1152 = vmatpush3.bf16.msra.mxu1 %v1268_v12  ;;  %v1306_v7 = vld [vmem:[#allocation9 + $0x10] sm:$0xff]   ;;  %v1311_v12 = vld [vmem:[#allocation9 + $0x38] sm:$0xff]  }
  0x8d   :  { %1133 = vmatprep.subr.bf16.mxu0 %v1480_v0  ;;  %1153 = vmatprep.subr.bf16.mxu1 %v1480_v0 }
  0x90   :  { %1134 = vmatpush3.bf16.msra.mxu0 %v1261_v9  ;;  %1154 = vmatpush3.bf16.msra.mxu1 %v1269_v15  ;;  %v1308_v9 = vld [vmem:[#allocation9 + $0x20] sm:$0xff]   ;;  %v1314_v15 = vld [vmem:[#allocation10 + $0x10] sm:$0xff]  }
  0x91   :  { %1135 = vmatprep.subr.bf16.mxu0 %v1480_v0  ;;  %1155 = vmatprep.subr.bf16.mxu1 %v1480_v0 }
  0x94   :  { %1136 = vmatpush3.bf16.msra.mxu0 %v1262_v11  ;;  %1156 = vmatpush3.bf16.msra.mxu1 %v1270_v17  ;;  %v1310_v11 = vld [vmem:[#allocation9 + $0x30] sm:$0xff]   ;;  %v1316_v17 = vld [vmem:[#allocation10 + $0x20] sm:$0xff]  }
  0x95   :  { %1137 = vmatprep.subr.bf16.mxu0 %v1480_v0  ;;  %1157 = vmatprep.subr.bf16.mxu1 %v1480_v0 }
  0x98   :  { %1138 = vmatpush3.bf16.msra.mxu0 %v1263_v13  ;;  %1158 = vmatpush3.bf16.msra.mxu1 %v1271_v18  ;;  %v1312_v13 = vld [vmem:[#allocation10] sm:$0xff]   ;;  %v1317_v18 = vld [vmem:[#allocation10 + $0x28] sm:$0xff]  }
  0x99   :  { %1163 = vmatprep.subr.bf16.mxu0 %v1480_v0  ;;  %589 = vmatprep.subr.bf16.mxu1 %v1282_v36 }
  0x9b   :  { %1140 = vmatmul.mubr.bf16.vlgmr.msra.gmra.mrb[0].mxu0 %v158_v16  ;;  %v1315_v16 = vld [vmem:[#allocation10 + $0x18] sm:$0xff]  }
  0x9c   :  { %1179 = vmatprep.mubr.msk.bf16.mxu0 %vm1481_vm0, %v1480_v0  ;;  %1164 = vmatpush3.bf16.msra.mxu0 %v1272_v19  ;;  %v499_v19 = vlaneseq }
  0x9d   :  { %1165 = vmatprep.subr.bf16.mxu0 %v1480_v0 }
  0xa0   :  { %1166 = vmatpush3.bf16.msra.mxu0 %v1273_v20  ;;  %v500_v20 = vshrl.u32 %v499_v19, 7 }
  0xa1   :  { %1167 = vmatprep.subr.bf16.mxu0 %v1480_v0 }
  0xa4   :  { %1168 = vmatpush3.bf16.msra.mxu0 %v1274_v21  ;;  %v501_v21 = vsub.s32 0, %v500_v20 }
  0xa5   :  { %1169 = vmatprep.subr.bf16.mxu0 %v1480_v0 }
  0xa8   :  { %1170 = vmatpush3.bf16.msra.mxu0 %v1275_v22  ;;  %v497_v22 = vld [vmem:[%s1823_s9] sm:$0x3] }
  0xa9   :  { %1171 = vmatprep.subr.bf16.mxu0 %v1480_v0 }
  0xac   :  { %1172 = vmatpush3.bf16.msra.mxu0 %v1276_v23  ;;  %v505_v23 = vsub.s32 1, %v500_v20 }
  0xad   :  { %1173 = vmatprep.subr.bf16.mxu0 %v1480_v0 }
  0xb0   :  { %1174 = vmatpush3.bf16.msra.mxu0 %v1277_v24  ;;  %v502_v24 = vrot.slane %v497_v22, %v501_v21 }
  0xb1   :  { %1175 = vmatprep.subr.bf16.mxu0 %v1480_v0 }
  0xb4   :  { %1176 = vmatpush3.bf16.msra.mxu0 %v1278_v33 }
  0xb5   :  { %1177 = vmatprep.subr.bf16.mxu0 %v1480_v0 }
  0xb8   :  { %1178 = vmatpush3.bf16.msra.mxu0 %v1279_v34  ;;  %v633_v34 = vld [vmem:[%s1849_s8] sm:$0xff] }
  0xb9   :  { %1183 = vmatprep.subr.bf16.mxu0 %v1480_v0 }
 0x16e   :  { %v247_v26 = vpop.f32.mrb[0].mxu0 }
 0x16f   :  { %v248_v27 = vadd.f32 %v999_v25, %v247_v26  ;;  %v1141_v28 = vpop.f32.mrb[1].mxu0  ;;  %v506_v25 = vrot.slane %v497_v22, %v505_v23 }
 0x170   :  { %v250_v29 = vpop.f32.mrb[2].mxu0 }
 0x171   :  { %v253_v30 = vmax.f32 %v248_v27, 0.0  ;;  %v1142_v31 = vpop.f32.mrb[3].mxu0 }
 0x173   :  { %v271_v32 = vpack.c.bf16 %v253_v30, %v253_v30 }
 0x175   :  { %1160 = vmatmul.mubr.bf16.vlgmr.msra.gmra.mrb[0].mxu1 %v271_v32 }
 0x176   :  { %590 = vmatpush1.bf16.msra.mxu1 %v1280_v35  ;;  %621 = vmatprep.mubr.bf16.mxu1 %v1482_v59 }
 0x177   :  { %591 = vmatprep.subr.bf16.mxu1 %v1285_v37 }
 0x17a   :  { %592 = vmatpush1.bf16.msra.mxu1 %v1283_v38 }
 0x17b   :  { %593 = vmatprep.subr.bf16.mxu1 %v1288_v39  ;;  %v1318_v39 = vld [vmem:[#allocation10 + $0x30] sm:$0xff]  }
 0x17e   :  { %594 = vmatpush1.bf16.msra.mxu1 %v1286_v40  ;;  %v1319_v40 = vld [vmem:[#allocation10 + $0x38] sm:$0xff]  }
 0x17f   :  { %595 = vmatprep.subr.bf16.mxu1 %v1291_v41  ;;  %v1320_v41 = vld [vmem:[%s1828_s14] sm:$0xff]  }
 0x182   :  { %596 = vmatpush1.bf16.msra.mxu1 %v1289_v42  ;;  %v1321_v42 = vld [vmem:[%s1828_s14 + $0x8] sm:$0xff]  }
 0x183   :  { %597 = vmatprep.subr.bf16.mxu1 %v1294_v43  ;;  %v1322_v43 = vld [vmem:[%s1828_s14 + $0x10] sm:$0xff]  }
 0x186   :  { %598 = vmatpush1.bf16.msra.mxu1 %v1292_v44  ;;  %v1323_v44 = vld [vmem:[%s1828_s14 + $0x18] sm:$0xff]  }
 0x187   :  { %599 = vmatprep.subr.bf16.mxu1 %v1297_v45  ;;  %v1324_v45 = vld [vmem:[%s1828_s14 + $0x20] sm:$0xff]  }
 0x18a   :  { %600 = vmatpush1.bf16.msra.mxu1 %v1295_v46  ;;  %v1325_v46 = vld [vmem:[%s1828_s14 + $0x28] sm:$0xff]  }
 0x18b   :  { %601 = vmatprep.subr.bf16.mxu1 %v1300_v47  ;;  %v1042_v47 = vld [vmem:[%s1825_s11] ss:$0 sm:$0xff] }
 0x18e   :  { %602 = vmatpush1.bf16.msra.mxu1 %v1298_v48 }
 0x18f   :  { %603 = vmatprep.subr.bf16.mxu1 %v1303_v57  ;;  %v1051_v57 = vld [vmem:[%s1827_s13] ss:$0 sm:$0xff] }
 0x192   :  { %604 = vmatpush1.bf16.msra.mxu1 %v1301_v58 }
 0x193   :  { %1203 = vmatprep.subr.bf16.mxu1 %v1480_v0 }
 0x248   :  { %v360_v50 = vpop.f32.mrb[0].mxu1 }
 0x249   :  { %v361_v51 = vadd.f32 %v1008_v49, %v360_v50  ;;  %v1161_v52 = vpop.f32.mrb[1].mxu1 }
 0x24a   :  { %v363_v53 = vpop.f32.mrb[2].mxu1 }
 0x24b   :  { %v366_v54 = vmax.f32 %v361_v51, 0.0  ;;  %v1162_v55 = vpop.f32.mrb[3].mxu1 }
 0x24c   :  { %v1326_v55 = vld [vmem:[%s1828_s14 + $0x30] sm:$0xff]  }
 0x24d   :  { %v384_v56 = vpack.c.bf16 %v366_v54, %v366_v54 }
 0x24f   :  { %1180 = vmatmul.mubr.bf16.vlgmr.msra.gmra.mrb[4].mxu0 %v384_v56  ;;  %v1327_v56 = vld [vmem:[%s1828_s14 + $0x38] sm:$0xff]  }
 0x250   :  { %1199 = vmatprep.mubr.msk.bf16.mxu0 %vm1481_vm0, %v1480_v0  ;;  %1184 = vmatpush3.bf16.msra.mxu0 %v1304_v60 }
 0x251   :  { %1185 = vmatprep.subr.bf16.mxu0 %v1480_v0 }
 0x254   :  { %1186 = vmatpush3.bf16.msra.mxu0 %v1305_v61 }
 0x255   :  { %1187 = vmatprep.subr.bf16.mxu0 %v1480_v0 }
 0x258   :  { %1188 = vmatpush3.bf16.msra.mxu0 %v1306_v7 }
 0x259   :  { %1189 = vmatprep.subr.bf16.mxu0 %v1480_v0 }
 0x25c   :  { %1190 = vmatpush3.bf16.msra.mxu0 %v1307_v8 }
 0x25d   :  { %1191 = vmatprep.subr.bf16.mxu0 %v1480_v0 }
 0x260   :  { %1192 = vmatpush3.bf16.msra.mxu0 %v1308_v9 }
 0x261   :  { %1193 = vmatprep.subr.bf16.mxu0 %v1480_v0 }
 0x264   :  { %1194 = vmatpush3.bf16.msra.mxu0 %v1309_v10 }
 0x265   :  { %1195 = vmatprep.subr.bf16.mxu0 %v1480_v0 }
 0x268   :  { %1196 = vmatpush3.bf16.msra.mxu0 %v1310_v11 }
 0x269   :  { %1197 = vmatprep.subr.bf16.mxu0 %v1480_v0 }
 0x26c   :  { %1198 = vmatpush3.bf16.msra.mxu0 %v1311_v12 }
 0x26d   :  { %1223 = vmatprep.subr.bf16.mxu0 %v1480_v0 }
 0x322   :  { %v473_v63 = vpop.f32.mrb[4].mxu0 }
 0x323   :  { %v474_v1 = vadd.f32 %v1017_v62, %v473_v63  ;;  %v1181_v2 = vpop.f32.mrb[5].mxu0 }
 0x324   :  { %v476_v3 = vpop.f32.mrb[6].mxu0 }
 0x325   :  { %v479_v4 = vmax.f32 %v474_v1, 0.0  ;;  %v1182_v5 = vpop.f32.mrb[7].mxu0 }
 0x327   :  { %v480_v6 = vpack.c.bf16 %v479_v4, %v479_v4 }
 0x329   :  { %622 = vmatmul.mubr.bf16.vlgmr.msra.gmra.mrb[4].mxu1 %v480_v6 }
 0x32a   :  { %1219 = vmatprep.mubr.msk.bf16.mxu1 %vm1481_vm0, %v1480_v0  ;;  %1204 = vmatpush3.bf16.msra.mxu1 %v1312_v13 }
 0x32b   :  { %1205 = vmatprep.subr.bf16.mxu1 %v1480_v0 }
 0x32e   :  { %1206 = vmatpush3.bf16.msra.mxu1 %v1313_v14 }
 0x32f   :  { %1207 = vmatprep.subr.bf16.mxu1 %v1480_v0 }
 0x332   :  { %1208 = vmatpush3.bf16.msra.mxu1 %v1314_v15 }
 0x333   :  { %1209 = vmatprep.subr.bf16.mxu1 %v1480_v0 }
 0x336   :  { %1210 = vmatpush3.bf16.msra.mxu1 %v1315_v16 }
 0x337   :  { %1211 = vmatprep.subr.bf16.mxu1 %v1480_v0 }
 0x33a   :  { %1212 = vmatpush3.bf16.msra.mxu1 %v1316_v17 }
 0x33b   :  { %1213 = vmatprep.subr.bf16.mxu1 %v1480_v0 }
 0x33e   :  { %1214 = vmatpush3.bf16.msra.mxu1 %v1317_v18 }
 0x33f   :  { %1215 = vmatprep.subr.bf16.mxu1 %v1480_v0 }
 0x342   :  { %1216 = vmatpush3.bf16.msra.mxu1 %v1318_v39 }
 0x343   :  { %1217 = vmatprep.subr.bf16.mxu1 %v1480_v0 }
 0x346   :  { %1218 = vmatpush3.bf16.msra.mxu1 %v1319_v40 }
 0x3fc   :  { %v623_v26 = vpop.f32.mrb[4].mxu1 }
 0x3fd   :  { %v624_v27 = vadd.f32 %v623_v26, %v502_v24  ;;  %v625_v28 = vpop.f32.mrb[5].mxu1 }
 0x3fe   :  { %v626_v29 = vadd.f32 %v625_v28, %v506_v25  ;;  %v627_v30 = vpop.f32.mrb[6].mxu1 }
 0x3ff   :  { %636 = vst [vmem:[%s1830_s16] sm:$0xff] %v624_v27  ;;  %v628_v31 = vpop.f32.mrb[7].mxu1 }
 0x400   :  { %v630_v32 = vmul.f32 0.5, %v626_v29  ;;  %637 = vst [vmem:[%s1831_s17] sm:$0xff] %v626_v29 }
 0x402   :  { %v631_v33 = vmul.f32 1.442695, %v630_v32 }
 0x404   :  { %1328 = vpow2.f32 %v631_v33 }
 0x40e   :  { %v1329_v35 = vpop.eup %1328 }
 0x40f   :  { %v634_v36 = vmul.f32 %v1329_v35, %v633_v34 }
 0x411   :  { %v635_v37 = vadd.f32 %v634_v36, %v624_v27 }
 0x413   :  { %638 = vst [vmem:[%s1832_s18] sm:$0xff] %v635_v37  ;;  %v656_v38 = vpack.c.bf16 %v635_v37, %v635_v37 }
 0x415   :  { %1200 = vmatmul.mubr.bf16.vlgmr.msra.gmra.mrb[8].mxu0 %v656_v38 }
 0x416   :  { %1239 = vmatprep.mubr.msk.bf16.mxu0 %vm1481_vm0, %v1480_v0  ;;  %1224 = vmatpush3.bf16.msra.mxu0 %v1320_v41 }
 0x417   :  { %1225 = vmatprep.subr.bf16.mxu0 %v1480_v0 }
 0x41a   :  { %1226 = vmatpush3.bf16.msra.mxu0 %v1321_v42 }
 0x41b   :  { %1227 = vmatprep.subr.bf16.mxu0 %v1480_v0 }
 0x41e   :  { %1228 = vmatpush3.bf16.msra.mxu0 %v1322_v43 }
 0x41f   :  { %1229 = vmatprep.subr.bf16.mxu0 %v1480_v0 }
 0x422   :  { %1230 = vmatpush3.bf16.msra.mxu0 %v1323_v44 }
 0x423   :  { %1231 = vmatprep.subr.bf16.mxu0 %v1480_v0 }
 0x426   :  { %1232 = vmatpush3.bf16.msra.mxu0 %v1324_v45 }
 0x427   :  { %1233 = vmatprep.subr.bf16.mxu0 %v1480_v0 }
 0x42a   :  { %1234 = vmatpush3.bf16.msra.mxu0 %v1325_v46 }
 0x42b   :  { %1235 = vmatprep.subr.bf16.mxu0 %v1480_v0 }
 0x42e   :  { %1236 = vmatpush3.bf16.msra.mxu0 %v1326_v55 }
 0x42f   :  { %1237 = vmatprep.subr.bf16.mxu0 %v1480_v0  ;;  %v1060_v0 = vld [vmem:[%s1829_s15] ss:$0 sm:$0xff] }
 0x432   :  { %1238 = vmatpush3.bf16.msra.mxu0 %v1327_v56 }
 0x4e8   :  { %v745_v48 = vpop.f32.mrb[8].mxu0 }
 0x4e9   :  { %v746_v49 = vadd.f32 %v1042_v47, %v745_v48  ;;  %v1201_v50 = vpop.f32.mrb[9].mxu0 }
 0x4ea   :  { %v748_v51 = vpop.f32.mrb[10].mxu0 }
 0x4eb   :  { %v751_v52 = vmax.f32 %v746_v49, 0.0  ;;  %v1202_v53 = vpop.f32.mrb[11].mxu0 }
 0x4ed   :  { %v769_v54 = vpack.c.bf16 %v751_v52, %v751_v52 }
 0x4ef   :  { %1220 = vmatmul.mubr.bf16.vlgmr.msra.gmra.mrb[8].mxu1 %v769_v54 }
 0x5c2   :  { %v858_v58 = vpop.f32.mrb[8].mxu1 }
 0x5c3   :  { %v859_v59 = vadd.f32 %v1051_v57, %v858_v58  ;;  %v1221_v60 = vpop.f32.mrb[9].mxu1 }
 0x5c4   :  { %v861_v61 = vpop.f32.mrb[10].mxu1 }
 0x5c5   :  { %v864_v62 = vmax.f32 %v859_v59, 0.0  ;;  %v1222_v63 = vpop.f32.mrb[11].mxu1 }
 0x5c7   :  { %v882_v1 = vpack.c.bf16 %v864_v62, %v864_v62 }
 0x5c9   :  { %1240 = vmatmul.mubr.bf16.vlgmr.msra.gmra.mrb[12].mxu0 %v882_v1 }
 0x69c   :  { %v971_v2 = vpop.f32.mrb[12].mxu0 }
 0x69d   :  { %v972_v3 = vadd.f32 %v1060_v0, %v971_v2  ;;  %v1241_v4 = vpop.f32.mrb[13].mxu0 }
 0x69e   :  { %v974_v5 = vpop.f32.mrb[14].mxu0 }
 0x69f   :  { %v977_v6 = vmax.f32 %v972_v3, 0.0  ;;  %v1242_v7 = vpop.f32.mrb[15].mxu0 }
 0x6a1   :  { %978 = vst [vmem:[%s1850_s24] sm:$0xff] %v977_v6 }
 0x6a2   :  { %995 = vsyncpa [#allocation3], 1 }
 0x6a3   :  { %996 = vsyncpa [#allocation5], 1 }
 0x6a4   :  { %997 = vsyncpa [#allocation8], 1 }
 0x6a5   :  { %998 = vsyncpa [#allocation11], 1 }

// kernel: _vae_forward_impl.1
= control target key start
LH: loop header
LB: loop body
LE: loop exit
PB: predicated region body
PF: predicated region fallthrough
CT: control target
= control target key end

     0   :  { %s1814_s0 = inlined_call_operand.vmem [shape: f32[8,128], index: 0, kind: input, shape index: {}]   ;;  %s1815_s1 = inlined_call_operand.vmem [shape: f32[8,128], index: 1, kind: input, shape index: {}]   ;;  %s1816_s2 = inlined_call_operand.hbm [shape: bf16[128,128], index: 2, kind: input, shape index: {}]   ;;  %s1817_s3 = inlined_call_operand.vmem [shape: f32[1,128], index: 3, kind: input, shape index: {}]   ;;  %s1818_s4 = inlined_call_operand.hbm [shape: bf16[128,128], index: 4, kind: input, shape index: {}]   ;;  %s1819_s5 = inlined_call_operand.vmem [shape: f32[1,128], index: 5, kind: input, shape index: {}]   ;;  %s1820_s6 = inlined_call_operand.hbm [shape: bf16[128,128], index: 6, kind: input, shape index: {}]   ;;  %s1821_s7 = inlined_call_operand.vmem [shape: f32[1,128], index: 7, kind: input, shape index: {}]   ;;  %s1822_s8 = inlined_call_operand.hbm [shape: bf16[128,256], index: 8, kind: input, shape index: {}]   ;;  %s1823_s9 = inlined_call_operand.vmem [shape: f32[1,256], index: 9, kind: input, shape index: {}]   ;;  %s1824_s10 = inlined_call_operand.hbm [shape: bf16[128,128], index: 10, kind: input, shape index: {}]   ;;  %s1825_s11 = inlined_call_operand.vmem [shape: f32[1,128], index: 11, kind: input, shape index: {}]   ;;  %s1826_s12 = inlined_call_operand.hbm [shape: bf16[128,128], index: 12, kind: input, shape index: {}]   ;;  %s1827_s13 = inlined_call_operand.vmem [shape: f32[1,128], index: 13, kind: input, shape index: {}]   ;;  %s1828_s14 = inlined_call_operand.vmem [shape: bf16[128,128], index: 14, kind: input, shape index: {}]   ;;  %s1829_s15 = inlined_call_operand.vmem [shape: f32[1,128], index: 15, kind: input, shape index: {}]   ;;  %s1830_s16 = inlined_call_operand.vmem [shape: f32[8,128], index: 16, kind: output, shape index: {0}]   ;;  %s1831_s17 = inlined_call_operand.vmem [shape: f32[8,128], index: 17, kind: output, shape index: {1}]   ;;  %s1832_s18 = inlined_call_operand.vmem [shape: f32[8,128], index: 18, kind: output, shape index: {2}]   ;;  %s1833_s19 = inlined_call_operand.vmem [shape: f32[8,128], index: 19, kind: output, shape index: {3}]  }
   0x1   :  { %1839 = sst [smem:[#allocation16_spill]] %s1814_s0 }
   0x2   :  { %1840 = sst [smem:[#allocation17_spill]] %s1815_s1 }
   0x3   :  { %1841 = sst [smem:[#allocation18_spill]] %s1816_s2 }
   0x4   :  { %1842 = sst [smem:[#allocation19_spill]] %s1817_s3 }
   0x5   :  { %1843 = sst [smem:[#allocation20_spill]] %s1833_s19 }
   0x6   :  { %25 = vsyncpa [#allocation3], 0 }
   0x7   :  { %26 = vsyncpa [#allocation5], 0 }
   0x8   :  { %27 = vsyncpa [#allocation8], 0 }
   0x9   :  { %28 = vsyncpa [#allocation11], 0  ;;  %s1470_s0 = smov [#allocation4]   ;;  %s1471_s20 = smov [#allocation7]  }
   0xa   :  { %s52_s30 = sshll.u32 %s1470_s0, 4  ;;  %s80_s21 = sshll.u32 %s1471_s20, 4  ;;  %s53_s30 = int_to_ptr.vmem [resolvable:$true] %s52_s30  ;;  %s1583_s21 = int_to_ptr.vmem [resolvable:$true] %s80_s21 }
   0xb   :  { %s1330_s2 = scalar_lea.hbm %s1818_s4, 1024 }
   0xc   :  { %p1331_p0 = scmp.ne.s32.totalorder %s1818_s4, %s1330_s2  ;;  %p1334_p1 = scmp.lt.u32.totalorder %s1330_s2, %s1818_s4 }
   0xe   :  { %p1336_p2 = pnand %p1334_p1, %p1331_p0 }
  0x10   :  { %1339 = shalt.err (!%p1336_p2)
}
  0x11   :  { %s1340_s26 = scalar_lea.vmem %s53_s30, 1024  ;;  %p1345_p4 = scmp.lt.s32.totalorder %s53_s30, %s53_s30 }
  0x12   :  { %p1341_p3 = scmp.ne.s32.totalorder %s53_s30, %s1340_s26  ;;  %p1346_p5 = scmp.lt.s32.totalorder %s1340_s26, %s1340_s26 }
  0x14   :  { %p1347_p6 = por %p1346_p5, %p1345_p4 }
  0x16   :  { %p1348_p7 = pnand %p1347_p6, %p1341_p3 }
  0x18   :  { %1351 = shalt.err (!%p1348_p7)
}
  0x19   :  { %s1835_s27 = smov 64   ;;  %s1837_s28 = smov 4  }
  0x1a   :  { %58 = dma.hbm_to_vmem [thread:$0]  %s1818_s4, 1024, %s53_s30, [#allocation5], %s1835_s27, %s1835_s27, %s1837_s28  }
  0x1b   :  { %s1352_s22 = scalar_lea.hbm %s1822_s8, 2048 }
  0x1c   :  { %p1353_p8 = scmp.ne.s32.totalorder %s1822_s8, %s1352_s22  ;;  %p1356_p9 = scmp.lt.u32.totalorder %s1352_s22, %s1822_s8 }
  0x1e   :  { %p1358_p10 = pnand %p1356_p9, %p1353_p8 }
  0x20   :  { %1361 = shalt.err (!%p1358_p10)
}
  0x21   :  { %s1362_s3 = scalar_lea.vmem %s1583_s21, 2048  ;;  %p1367_p12 = scmp.lt.s32.totalorder %s1583_s21, %s1583_s21 }
  0x22   :  { %p1363_p11 = scmp.ne.s32.totalorder %s1583_s21, %s1362_s3  ;;  %p1368_p13 = scmp.lt.s32.totalorder %s1362_s3, %s1362_s3 }
  0x24   :  { %p1369_p0 = por %p1368_p13, %p1367_p12 }
  0x26   :  { %p1370_p1 = pnand %p1369_p0, %p1363_p11 }
  0x28   :  { %1373 = shalt.err (!%p1370_p1)
}
  0x29   :  { %s1474_s4 = smov 128   ;;  %s1475_s30 = smov 8  }
  0x2a   :  { %86 = dma.hbm_to_vmem [thread:$0]  %s1822_s8, 2048, %s1583_s21, [#allocation8], %s1474_s4, %s1474_s4, %s1475_s30  }
  0x2b   :  { %s1476_s0 = smov [#allocation2]   ;;  %s1477_s1 = smov [#allocation6]  }
  0x2c   :  { %s38_s20 = sshll.u32 %s1476_s0, 4  ;;  %s66_s22 = sshll.u32 %s1477_s1, 4  ;;  %s39_s20 = int_to_ptr.vmem [resolvable:$true] %s38_s20  ;;  %s1617_s22 = int_to_ptr.vmem [resolvable:$true] %s66_s22 }
  0x2d   :  { %s1844_s24 = sld [smem:[#allocation18_spill]] }
  0x33   :  { %s1374_s25 = scalar_lea.hbm %s1844_s24, 1024 }
  0x34   :  { %p1375_p2 = scmp.ne.s32.totalorder %s1844_s24, %s1374_s25  ;;  %p1378_p3 = scmp.lt.u32.totalorder %s1374_s25, %s1844_s24 }
  0x36   :  { %p1380_p4 = pnand %p1378_p3, %p1375_p2 }
  0x38   :  { %1383 = shalt.err (!%p1380_p4)
}
  0x39   :  { %s1384_s8 = scalar_lea.vmem %s39_s20, 1024  ;;  %p1389_p6 = scmp.lt.s32.totalorder %s39_s20, %s39_s20 }
  0x3a   :  { %p1385_p5 = scmp.ne.s32.totalorder %s39_s20, %s1384_s8  ;;  %p1390_p7 = scmp.lt.s32.totalorder %s1384_s8, %s1384_s8 }
  0x3c   :  { %p1391_p8 = por %p1390_p7, %p1389_p6 }
  0x3e   :  { %p1392_p9 = pnand %p1391_p8, %p1385_p5 }
  0x40   :  { %1395 = shalt.err (!%p1392_p9)
}
  0x41   :  { %s1845_s21 = smov 4   ;;  %s1846_s4 = smov 64  }
  0x42   :  { %44 = dma.hbm_to_vmem [thread:$0]  %s1844_s24, 1024, %s39_s20, [#allocation3], %s1846_s4, %s1846_s4, %s1845_s21  }
  0x43   :  { %s1396_s19 = scalar_lea.hbm %s1820_s6, 1024 }
  0x44   :  { %p1397_p10 = scmp.ne.s32.totalorder %s1820_s6, %s1396_s19  ;;  %p1400_p11 = scmp.lt.u32.totalorder %s1396_s19, %s1820_s6 }
  0x46   :  { %p1402_p12 = pnand %p1400_p11, %p1397_p10 }
  0x48   :  { %1405 = shalt.err (!%p1402_p12)
}
  0x49   :  { %s1406_s23 = scalar_lea.vmem %s1617_s22, 1024  ;;  %p1411_p0 = scmp.lt.s32.totalorder %s1617_s22, %s1617_s22 }
  0x4a   :  { %p1407_p13 = scmp.ne.s32.totalorder %s1617_s22, %s1406_s23  ;;  %p1412_p1 = scmp.lt.s32.totalorder %s1406_s23, %s1406_s23 }
  0x4c   :  { %p1413_p2 = por %p1412_p1, %p1411_p0 }
  0x4e   :  { %p1414_p3 = pnand %p1413_p2, %p1407_p13 }
  0x50   :  { %1417 = shalt.err (!%p1414_p3)
}
  0x51   :  { %72 = dma.hbm_to_vmem [thread:$0]  %s1820_s6, 1024, %s1617_s22, [#allocation5], %s1846_s4, %s1846_s4, %s1845_s21  }
  0x52   :  { %s1478_s25 = smov [#allocation9]   ;;  %s1479_s8 = smov [#allocation10]  }
  0x53   :  { %s94_s3 = sshll.u32 %s1478_s25, 4  ;;  %s108_s30 = sshll.u32 %s1479_s8, 4  ;;  %s95_s3 = int_to_ptr.vmem [resolvable:$true] %s94_s3  ;;  %s1654_s30 = int_to_ptr.vmem [resolvable:$true] %s108_s30 }
  0x54   :  { %s1418_s29 = scalar_lea.hbm %s1824_s10, 1024 }
  0x55   :  { %p1419_p4 = scmp.ne.s32.totalorder %s1824_s10, %s1418_s29  ;;  %p1422_p5 = scmp.lt.u32.totalorder %s1418_s29, %s1824_s10 }
  0x57   :  { %p1424_p6 = pnand %p1422_p5, %p1419_p4 }
  0x59   :  { %1427 = shalt.err (!%p1424_p6)
}
  0x5a   :  { %s1428_s6 = scalar_lea.vmem %s95_s3, 1024  ;;  %p1433_p8 = scmp.lt.s32.totalorder %s95_s3, %s95_s3 }
  0x5b   :  { %p1429_p7 = scmp.ne.s32.totalorder %s95_s3, %s1428_s6  ;;  %p1434_p9 = scmp.lt.s32.totalorder %s1428_s6, %s1428_s6 }
  0x5d   :  { %p1435_p10 = por %p1434_p9, %p1433_p8 }
  0x5f   :  { %p1436_p11 = pnand %p1435_p10, %p1429_p7 }
  0x61   :  { %1439 = shalt.err (!%p1436_p11)
}
  0x62   :  { %100 = dma.hbm_to_vmem [thread:$0]  %s1824_s10, 1024, %s95_s3, [#allocation8], %s1846_s4, %s1846_s4, %s1845_s21  }
  0x63   :  { %s1440_s24 = scalar_lea.hbm %s1826_s12, 1024 }
  0x64   :  { %p1441_p12 = scmp.ne.s32.totalorder %s1826_s12, %s1440_s24  ;;  %p1444_p13 = scmp.lt.u32.totalorder %s1440_s24, %s1826_s12 }
  0x66   :  { %p1446_p0 = pnand %p1444_p13, %p1441_p12 }
  0x68   :  { %1449 = shalt.err (!%p1446_p0)
}
  0x69   :  { %s1450_s29 = scalar_lea.vmem %s1654_s30, 1024  ;;  %p1455_p2 = scmp.lt.s32.totalorder %s1654_s30, %s1654_s30 }
  0x6a   :  { %p1451_p1 = scmp.ne.s32.totalorder %s1654_s30, %s1450_s29  ;;  %p1456_p3 = scmp.lt.s32.totalorder %s1450_s29, %s1450_s29 }
  0x6c   :  { %p1457_p4 = por %p1456_p3, %p1455_p2 }
  0x6e   :  { %p1458_p5 = pnand %p1457_p4, %p1451_p1 }
  0x70   :  { %1461 = shalt.err (!%p1458_p5)
}
  0x71   :  { %114 = dma.hbm_to_vmem [thread:$0]  %s1826_s12, 1024, %s1654_s30, [#allocation11], %s1846_s4, %s1846_s4, %s1845_s21  }
  0x72   :  { %1462 = dma.done.wait [#allocation3], 1024  }
  0x73   :  { %1463 = vsyncadd [#allocation3], 4294966272 }
  0x74   :  { %1464 = dma.done.wait [#allocation5], 2048  }
  0x75   :  { %1465 = vsyncadd [#allocation5], 4294965248 }
  0x76   :  { %1466 = dma.done.wait [#allocation8], 3072  }
  0x77   :  { %1467 = vsyncadd [#allocation8], 4294964224 }
  0x78   :  { %1468 = dma.done.wait [#allocation11], 1024  }
  0x79   :  { %1469 = vsyncadd [#allocation11], 4294966272  ;;  %v1480_v0 = vmov 0.0   ;;  %vm1481_vm0 = vmmov 0   ;;  %v1256_v1 = vld [vmem:[#allocation2] sm:$0xff]   ;;  %v1257_v2 = vld [vmem:[#allocation2 + $0x8] sm:$0xff]  }
  0x7a   :  { %1123 = vmatprep.subr.bf16.mxu0 %v1480_v0  ;;  %1139 = vmatprep.mubr.msk.bf16.mxu0 %vm1481_vm0, %v1480_v0  ;;  %v1258_v3 = vld [vmem:[#allocation2 + $0x10] sm:$0xff]   ;;  %v1264_v4 = vld [vmem:[#allocation4] sm:$0xff]   ;;  %v1259_v5 = vld [vmem:[#allocation2 + $0x18] sm:$0xff]   ;;  %s1847_s4 = sld [smem:[#allocation16_spill]]  ;;  %s1848_s28 = sld [smem:[#allocation19_spill]]  ;;  %v1482_v59 = vmov 0  }
  0x7b   :  { %1143 = vmatprep.subr.bf16.mxu1 %v1480_v0  ;;  %1159 = vmatprep.mubr.msk.bf16.mxu1 %vm1481_vm0, %v1480_v0  ;;  %v1265_v6 = vld [vmem:[#allocation4 + $0x8] sm:$0xff]   ;;  %v1260_v7 = vld [vmem:[#allocation2 + $0x20] sm:$0xff]   ;;  %v1266_v8 = vld [vmem:[#allocation4 + $0x10] sm:$0xff]   ;;  %s1849_s8 = sld [smem:[#allocation17_spill]]  ;;  %s1850_s24 = sld [smem:[#allocation20_spill]] }
  0x7c   :  { %1124 = vmatpush3.bf16.msra.mxu0 %v1256_v1  ;;  %1144 = vmatpush3.bf16.msra.mxu1 %v1264_v4  ;;  %v1261_v9 = vld [vmem:[#allocation2 + $0x28] sm:$0xff]   ;;  %v1267_v10 = vld [vmem:[#allocation4 + $0x18] sm:$0xff]   ;;  %v1262_v11 = vld [vmem:[#allocation2 + $0x30] sm:$0xff]  }
  0x7d   :  { %1125 = vmatprep.subr.bf16.mxu0 %v1480_v0  ;;  %1145 = vmatprep.subr.bf16.mxu1 %v1480_v0  ;;  %v1268_v12 = vld [vmem:[#allocation4 + $0x20] sm:$0xff]   ;;  %v1263_v13 = vld [vmem:[#allocation2 + $0x38] sm:$0xff]   ;;  %v1269_v15 = vld [vmem:[#allocation4 + $0x28] sm:$0xff]  }
  0x7e   :  { %v1270_v17 = vld [vmem:[#allocation4 + $0x30] sm:$0xff]   ;;  %v1271_v18 = vld [vmem:[#allocation4 + $0x38] sm:$0xff]   ;;  %v1272_v19 = vld [vmem:[#allocation6] sm:$0xff]  }
  0x7f   :  { %v1273_v20 = vld [vmem:[#allocation6 + $0x8] sm:$0xff]   ;;  %v1274_v21 = vld [vmem:[#allocation6 + $0x10] sm:$0xff]   ;;  %v1275_v22 = vld [vmem:[#allocation6 + $0x18] sm:$0xff]  }
  0x80   :  { %1126 = vmatpush3.bf16.msra.mxu0 %v1257_v2  ;;  %1146 = vmatpush3.bf16.msra.mxu1 %v1265_v6  ;;  %v140_v14 = vld [vmem:[%s1847_s4] sm:$0xff]  ;;  %v1276_v23 = vld [vmem:[#allocation6 + $0x20] sm:$0xff]   ;;  %v1277_v24 = vld [vmem:[#allocation6 + $0x28] sm:$0xff]  }
  0x81   :  { %1127 = vmatprep.subr.bf16.mxu0 %v1480_v0  ;;  %1147 = vmatprep.subr.bf16.mxu1 %v1480_v0  ;;  %v158_v16 = vpack.c.bf16 %v140_v14, %v140_v14  ;;  %v999_v25 = vld [vmem:[%s1848_s28] ss:$0 sm:$0xff]  ;;  %v1278_v33 = vld [vmem:[#allocation6 + $0x30] sm:$0xff]   ;;  %v1280_v35 = vld [vmem:[#allocation7] ss:$8 sps:$4 sm:$0xff]  }
  0x82   :  { %v1279_v34 = vld [vmem:[#allocation6 + $0x38] sm:$0xff]   ;;  %v1282_v36 = vld [vmem:[#allocation7 + $0x4] ss:$8 sps:$4 sm:$0xff]   ;;  %v1286_v40 = vld [vmem:[#allocation7 + $0x20] ss:$8 sps:$4 sm:$0xff]  }
  0x83   :  { %v1285_v37 = vld [vmem:[#allocation7 + $0x14] ss:$8 sps:$4 sm:$0xff]   ;;  %v1283_v38 = vld [vmem:[#allocation7 + $0x10] ss:$8 sps:$4 sm:$0xff]   ;;  %v1288_v39 = vld [vmem:[#allocation7 + $0x24] ss:$8 sps:$4 sm:$0xff]  }
  0x84   :  { %1128 = vmatpush3.bf16.msra.mxu0 %v1258_v3  ;;  %1148 = vmatpush3.bf16.msra.mxu1 %v1266_v8  ;;  %v1291_v41 = vld [vmem:[#allocation7 + $0x34] ss:$8 sps:$4 sm:$0xff]   ;;  %v1289_v42 = vld [vmem:[#allocation7 + $0x30] ss:$8 sps:$4 sm:$0xff]   ;;  %v1294_v43 = vld [vmem:[#allocation7 + $0x44] ss:$8 sps:$4 sm:$0xff]  }
  0x85   :  { %1129 = vmatprep.subr.bf16.mxu0 %v1480_v0  ;;  %1149 = vmatprep.subr.bf16.mxu1 %v1480_v0  ;;  %v1292_v44 = vld [vmem:[#allocation7 + $0x40] ss:$8 sps:$4 sm:$0xff]   ;;  %v1297_v45 = vld [vmem:[#allocation7 + $0x54] ss:$8 sps:$4 sm:$0xff]   ;;  %v1295_v46 = vld [vmem:[#allocation7 + $0x50] ss:$8 sps:$4 sm:$0xff]  }
  0x86   :  { %v1300_v47 = vld [vmem:[#allocation7 + $0x64] ss:$8 sps:$4 sm:$0xff]   ;;  %v1298_v48 = vld [vmem:[#allocation7 + $0x60] ss:$8 sps:$4 sm:$0xff]   ;;  %v1008_v49 = vld [vmem:[%s1819_s5] ss:$0 sm:$0xff] }
  0x87   :  { %v1303_v57 = vld [vmem:[#allocation7 + $0x74] ss:$8 sps:$4 sm:$0xff]   ;;  %v1301_v58 = vld [vmem:[#allocation7 + $0x70] ss:$8 sps:$4 sm:$0xff]   ;;  %v1304_v60 = vld [vmem:[#allocation9] sm:$0xff]  }
  0x88   :  { %1130 = vmatpush3.bf16.msra.mxu0 %v1259_v5  ;;  %1150 = vmatpush3.bf16.msra.mxu1 %v1267_v10  ;;  %v1305_v61 = vld [vmem:[#allocation9 + $0x8] sm:$0xff]   ;;  %v1017_v62 = vld [vmem:[%s1821_s7] ss:$0 sm:$0xff] }
  0x89   :  { %1131 = vmatprep.subr.bf16.mxu0 %v1480_v0  ;;  %1151 = vmatprep.subr.bf16.mxu1 %v1480_v0  ;;  %v1307_v8 = vld [vmem:[#allocation9 + $0x18] sm:$0xff]   ;;  %v1309_v10 = vld [vmem:[#allocation9 + $0x28] sm:$0xff]  }
  0x8a   :  { %v1313_v14 = vld [vmem:[#allocation10 + $0x8] sm:$0xff]  }
  0x8c   :  { %1132 = vmatpush3.bf16.msra.mxu0 %v1260_v7  ;;  %1152 = vmatpush3.bf16.msra.mxu1 %v1268_v12  ;;  %v1306_v7 = vld [vmem:[#allocation9 + $0x10] sm:$0xff]   ;;  %v1311_v12 = vld [vmem:[#allocation9 + $0x38] sm:$0xff]  }
  0x8d   :  { %1133 = vmatprep.subr.bf16.mxu0 %v1480_v0  ;;  %1153 = vmatprep.subr.bf16.mxu1 %v1480_v0 }
  0x90   :  { %1134 = vmatpush3.bf16.msra.mxu0 %v1261_v9  ;;  %1154 = vmatpush3.bf16.msra.mxu1 %v1269_v15  ;;  %v1308_v9 = vld [vmem:[#allocation9 + $0x20] sm:$0xff]   ;;  %v1314_v15 = vld [vmem:[#allocation10 + $0x10] sm:$0xff]  }
  0x91   :  { %1135 = vmatprep.subr.bf16.mxu0 %v1480_v0  ;;  %1155 = vmatprep.subr.bf16.mxu1 %v1480_v0 }
  0x94   :  { %1136 = vmatpush3.bf16.msra.mxu0 %v1262_v11  ;;  %1156 = vmatpush3.bf16.msra.mxu1 %v1270_v17  ;;  %v1310_v11 = vld [vmem:[#allocation9 + $0x30] sm:$0xff]   ;;  %v1316_v17 = vld [vmem:[#allocation10 + $0x20] sm:$0xff]  }
  0x95   :  { %1137 = vmatprep.subr.bf16.mxu0 %v1480_v0  ;;  %1157 = vmatprep.subr.bf16.mxu1 %v1480_v0 }
  0x98   :  { %1138 = vmatpush3.bf16.msra.mxu0 %v1263_v13  ;;  %1158 = vmatpush3.bf16.msra.mxu1 %v1271_v18  ;;  %v1312_v13 = vld [vmem:[#allocation10] sm:$0xff]   ;;  %v1317_v18 = vld [vmem:[#allocation10 + $0x28] sm:$0xff]  }
  0x99   :  { %1163 = vmatprep.subr.bf16.mxu0 %v1480_v0  ;;  %589 = vmatprep.subr.bf16.mxu1 %v1282_v36 }
  0x9b   :  { %1140 = vmatmul.mubr.bf16.vlgmr.msra.gmra.mrb[0].mxu0 %v158_v16  ;;  %v1315_v16 = vld [vmem:[#allocation10 + $0x18] sm:$0xff]  }
  0x9c   :  { %1179 = vmatprep.mubr.msk.bf16.mxu0 %vm1481_vm0, %v1480_v0  ;;  %1164 = vmatpush3.bf16.msra.mxu0 %v1272_v19  ;;  %v499_v19 = vlaneseq }
  0x9d   :  { %1165 = vmatprep.subr.bf16.mxu0 %v1480_v0 }
  0xa0   :  { %1166 = vmatpush3.bf16.msra.mxu0 %v1273_v20  ;;  %v500_v20 = vshrl.u32 %v499_v19, 7 }
  0xa1   :  { %1167 = vmatprep.subr.bf16.mxu0 %v1480_v0 }
  0xa4   :  { %1168 = vmatpush3.bf16.msra.mxu0 %v1274_v21  ;;  %v501_v21 = vsub.s32 0, %v500_v20 }
  0xa5   :  { %1169 = vmatprep.subr.bf16.mxu0 %v1480_v0 }
  0xa8   :  { %1170 = vmatpush3.bf16.msra.mxu0 %v1275_v22  ;;  %v497_v22 = vld [vmem:[%s1823_s9] sm:$0x3] }
  0xa9   :  { %1171 = vmatprep.subr.bf16.mxu0 %v1480_v0 }
  0xac   :  { %1172 = vmatpush3.bf16.msra.mxu0 %v1276_v23  ;;  %v505_v23 = vsub.s32 1, %v500_v20 }
  0xad   :  { %1173 = vmatprep.subr.bf16.mxu0 %v1480_v0 }
  0xb0   :  { %1174 = vmatpush3.bf16.msra.mxu0 %v1277_v24  ;;  %v502_v24 = vrot.slane %v497_v22, %v501_v21 }
  0xb1   :  { %1175 = vmatprep.subr.bf16.mxu0 %v1480_v0 }
  0xb4   :  { %1176 = vmatpush3.bf16.msra.mxu0 %v1278_v33 }
  0xb5   :  { %1177 = vmatprep.subr.bf16.mxu0 %v1480_v0 }
  0xb8   :  { %1178 = vmatpush3.bf16.msra.mxu0 %v1279_v34  ;;  %v633_v34 = vld [vmem:[%s1849_s8] sm:$0xff] }
  0xb9   :  { %1183 = vmatprep.subr.bf16.mxu0 %v1480_v0 }
 0x16e   :  { %v247_v26 = vpop.f32.mrb[0].mxu0 }
 0x16f   :  { %v248_v27 = vadd.f32 %v999_v25, %v247_v26  ;;  %v1141_v28 = vpop.f32.mrb[1].mxu0  ;;  %v506_v25 = vrot.slane %v497_v22, %v505_v23 }
 0x170   :  { %v250_v29 = vpop.f32.mrb[2].mxu0 }
 0x171   :  { %v253_v30 = vmax.f32 %v248_v27, 0.0  ;;  %v1142_v31 = vpop.f32.mrb[3].mxu0 }
 0x173   :  { %v271_v32 = vpack.c.bf16 %v253_v30, %v253_v30 }
 0x175   :  { %1160 = vmatmul.mubr.bf16.vlgmr.msra.gmra.mrb[0].mxu1 %v271_v32 }
 0x176   :  { %590 = vmatpush1.bf16.msra.mxu1 %v1280_v35  ;;  %621 = vmatprep.mubr.bf16.mxu1 %v1482_v59 }
 0x177   :  { %591 = vmatprep.subr.bf16.mxu1 %v1285_v37 }
 0x17a   :  { %592 = vmatpush1.bf16.msra.mxu1 %v1283_v38 }
 0x17b   :  { %593 = vmatprep.subr.bf16.mxu1 %v1288_v39  ;;  %v1318_v39 = vld [vmem:[#allocation10 + $0x30] sm:$0xff]  }
 0x17e   :  { %594 = vmatpush1.bf16.msra.mxu1 %v1286_v40  ;;  %v1319_v40 = vld [vmem:[#allocation10 + $0x38] sm:$0xff]  }
 0x17f   :  { %595 = vmatprep.subr.bf16.mxu1 %v1291_v41  ;;  %v1320_v41 = vld [vmem:[%s1828_s14] sm:$0xff]  }
 0x182   :  { %596 = vmatpush1.bf16.msra.mxu1 %v1289_v42  ;;  %v1321_v42 = vld [vmem:[%s1828_s14 + $0x8] sm:$0xff]  }
 0x183   :  { %597 = vmatprep.subr.bf16.mxu1 %v1294_v43  ;;  %v1322_v43 = vld [vmem:[%s1828_s14 + $0x10] sm:$0xff]  }
 0x186   :  { %598 = vmatpush1.bf16.msra.mxu1 %v1292_v44  ;;  %v1323_v44 = vld [vmem:[%s1828_s14 + $0x18] sm:$0xff]  }
 0x187   :  { %599 = vmatprep.subr.bf16.mxu1 %v1297_v45  ;;  %v1324_v45 = vld [vmem:[%s1828_s14 + $0x20] sm:$0xff]  }
 0x18a   :  { %600 = vmatpush1.bf16.msra.mxu1 %v1295_v46  ;;  %v1325_v46 = vld [vmem:[%s1828_s14 + $0x28] sm:$0xff]  }
 0x18b   :  { %601 = vmatprep.subr.bf16.mxu1 %v1300_v47  ;;  %v1042_v47 = vld [vmem:[%s1825_s11] ss:$0 sm:$0xff] }
 0x18e   :  { %602 = vmatpush1.bf16.msra.mxu1 %v1298_v48 }
 0x18f   :  { %603 = vmatprep.subr.bf16.mxu1 %v1303_v57  ;;  %v1051_v57 = vld [vmem:[%s1827_s13] ss:$0 sm:$0xff] }
 0x192   :  { %604 = vmatpush1.bf16.msra.mxu1 %v1301_v58 }
 0x193   :  { %1203 = vmatprep.subr.bf16.mxu1 %v1480_v0 }
 0x248   :  { %v360_v50 = vpop.f32.mrb[0].mxu1 }
 0x249   :  { %v361_v51 = vadd.f32 %v1008_v49, %v360_v50  ;;  %v1161_v52 = vpop.f32.mrb[1].mxu1 }
 0x24a   :  { %v363_v53 = vpop.f32.mrb[2].mxu1 }
 0x24b   :  { %v366_v54 = vmax.f32 %v361_v51, 0.0  ;;  %v1162_v55 = vpop.f32.mrb[3].mxu1 }
 0x24c   :  { %v1326_v55 = vld [vmem:[%s1828_s14 + $0x30] sm:$0xff]  }
 0x24d   :  { %v384_v56 = vpack.c.bf16 %v366_v54, %v366_v54 }
 0x24f   :  { %1180 = vmatmul.mubr.bf16.vlgmr.msra.gmra.mrb[4].mxu0 %v384_v56  ;;  %v1327_v56 = vld [vmem:[%s1828_s14 + $0x38] sm:$0xff]  }
 0x250   :  { %1199 = vmatprep.mubr.msk.bf16.mxu0 %vm1481_vm0, %v1480_v0  ;;  %1184 = vmatpush3.bf16.msra.mxu0 %v1304_v60 }
 0x251   :  { %1185 = vmatprep.subr.bf16.mxu0 %v1480_v0 }
 0x254   :  { %1186 = vmatpush3.bf16.msra.mxu0 %v1305_v61 }
 0x255   :  { %1187 = vmatprep.subr.bf16.mxu0 %v1480_v0 }
 0x258   :  { %1188 = vmatpush3.bf16.msra.mxu0 %v1306_v7 }
 0x259   :  { %1189 = vmatprep.subr.bf16.mxu0 %v1480_v0 }
 0x25c   :  { %1190 = vmatpush3.bf16.msra.mxu0 %v1307_v8 }
 0x25d   :  { %1191 = vmatprep.subr.bf16.mxu0 %v1480_v0 }
 0x260   :  { %1192 = vmatpush3.bf16.msra.mxu0 %v1308_v9 }
 0x261   :  { %1193 = vmatprep.subr.bf16.mxu0 %v1480_v0 }
 0x264   :  { %1194 = vmatpush3.bf16.msra.mxu0 %v1309_v10 }
 0x265   :  { %1195 = vmatprep.subr.bf16.mxu0 %v1480_v0 }
 0x268   :  { %1196 = vmatpush3.bf16.msra.mxu0 %v1310_v11 }
 0x269   :  { %1197 = vmatprep.subr.bf16.mxu0 %v1480_v0 }
 0x26c   :  { %1198 = vmatpush3.bf16.msra.mxu0 %v1311_v12 }
 0x26d   :  { %1223 = vmatprep.subr.bf16.mxu0 %v1480_v0 }
 0x322   :  { %v473_v63 = vpop.f32.mrb[4].mxu0 }
 0x323   :  { %v474_v1 = vadd.f32 %v1017_v62, %v473_v63  ;;  %v1181_v2 = vpop.f32.mrb[5].mxu0 }
 0x324   :  { %v476_v3 = vpop.f32.mrb[6].mxu0 }
 0x325   :  { %v479_v4 = vmax.f32 %v474_v1, 0.0  ;;  %v1182_v5 = vpop.f32.mrb[7].mxu0 }
 0x327   :  { %v480_v6 = vpack.c.bf16 %v479_v4, %v479_v4 }
 0x329   :  { %622 = vmatmul.mubr.bf16.vlgmr.msra.gmra.mrb[4].mxu1 %v480_v6 }
 0x32a   :  { %1219 = vmatprep.mubr.msk.bf16.mxu1 %vm1481_vm0, %v1480_v0  ;;  %1204 = vmatpush3.bf16.msra.mxu1 %v1312_v13 }
 0x32b   :  { %1205 = vmatprep.subr.bf16.mxu1 %v1480_v0 }
 0x32e   :  { %1206 = vmatpush3.bf16.msra.mxu1 %v1313_v14 }
 0x32f   :  { %1207 = vmatprep.subr.bf16.mxu1 %v1480_v0 }
 0x332   :  { %1208 = vmatpush3.bf16.msra.mxu1 %v1314_v15 }
 0x333   :  { %1209 = vmatprep.subr.bf16.mxu1 %v1480_v0 }
 0x336   :  { %1210 = vmatpush3.bf16.msra.mxu1 %v1315_v16 }
 0x337   :  { %1211 = vmatprep.subr.bf16.mxu1 %v1480_v0 }
 0x33a   :  { %1212 = vmatpush3.bf16.msra.mxu1 %v1316_v17 }
 0x33b   :  { %1213 = vmatprep.subr.bf16.mxu1 %v1480_v0 }
 0x33e   :  { %1214 = vmatpush3.bf16.msra.mxu1 %v1317_v18 }
 0x33f   :  { %1215 = vmatprep.subr.bf16.mxu1 %v1480_v0 }
 0x342   :  { %1216 = vmatpush3.bf16.msra.mxu1 %v1318_v39 }
 0x343   :  { %1217 = vmatprep.subr.bf16.mxu1 %v1480_v0 }
 0x346   :  { %1218 = vmatpush3.bf16.msra.mxu1 %v1319_v40 }
 0x3fc   :  { %v623_v26 = vpop.f32.mrb[4].mxu1 }
 0x3fd   :  { %v624_v27 = vadd.f32 %v623_v26, %v502_v24  ;;  %v625_v28 = vpop.f32.mrb[5].mxu1 }
 0x3fe   :  { %v626_v29 = vadd.f32 %v625_v28, %v506_v25  ;;  %v627_v30 = vpop.f32.mrb[6].mxu1 }
 0x3ff   :  { %636 = vst [vmem:[%s1830_s16] sm:$0xff] %v624_v27  ;;  %v628_v31 = vpop.f32.mrb[7].mxu1 }
 0x400   :  { %v630_v32 = vmul.f32 0.5, %v626_v29  ;;  %637 = vst [vmem:[%s1831_s17] sm:$0xff] %v626_v29 }
 0x402   :  { %v631_v33 = vmul.f32 1.442695, %v630_v32 }
 0x404   :  { %1328 = vpow2.f32 %v631_v33 }
 0x40e   :  { %v1329_v35 = vpop.eup %1328 }
 0x40f   :  { %v634_v36 = vmul.f32 %v1329_v35, %v633_v34 }
 0x411   :  { %v635_v37 = vadd.f32 %v634_v36, %v624_v27 }
 0x413   :  { %638 = vst [vmem:[%s1832_s18] sm:$0xff] %v635_v37  ;;  %v656_v38 = vpack.c.bf16 %v635_v37, %v635_v37 }
 0x415   :  { %1200 = vmatmul.mubr.bf16.vlgmr.msra.gmra.mrb[8].mxu0 %v656_v38 }
 0x416   :  { %1239 = vmatprep.mubr.msk.bf16.mxu0 %vm1481_vm0, %v1480_v0  ;;  %1224 = vmatpush3.bf16.msra.mxu0 %v1320_v41 }
 0x417   :  { %1225 = vmatprep.subr.bf16.mxu0 %v1480_v0 }
 0x41a   :  { %1226 = vmatpush3.bf16.msra.mxu0 %v1321_v42 }
 0x41b   :  { %1227 = vmatprep.subr.bf16.mxu0 %v1480_v0 }
 0x41e   :  { %1228 = vmatpush3.bf16.msra.mxu0 %v1322_v43 }
 0x41f   :  { %1229 = vmatprep.subr.bf16.mxu0 %v1480_v0 }
 0x422   :  { %1230 = vmatpush3.bf16.msra.mxu0 %v1323_v44 }
 0x423   :  { %1231 = vmatprep.subr.bf16.mxu0 %v1480_v0 }
 0x426   :  { %1232 = vmatpush3.bf16.msra.mxu0 %v1324_v45 }
 0x427   :  { %1233 = vmatprep.subr.bf16.mxu0 %v1480_v0 }
 0x42a   :  { %1234 = vmatpush3.bf16.msra.mxu0 %v1325_v46 }
 0x42b   :  { %1235 = vmatprep.subr.bf16.mxu0 %v1480_v0 }
 0x42e   :  { %1236 = vmatpush3.bf16.msra.mxu0 %v1326_v55 }
 0x42f   :  { %1237 = vmatprep.subr.bf16.mxu0 %v1480_v0  ;;  %v1060_v0 = vld [vmem:[%s1829_s15] ss:$0 sm:$0xff] }
 0x432   :  { %1238 = vmatpush3.bf16.msra.mxu0 %v1327_v56 }
 0x4e8   :  { %v745_v48 = vpop.f32.mrb[8].mxu0 }
 0x4e9   :  { %v746_v49 = vadd.f32 %v1042_v47, %v745_v48  ;;  %v1201_v50 = vpop.f32.mrb[9].mxu0 }
 0x4ea   :  { %v748_v51 = vpop.f32.mrb[10].mxu0 }
 0x4eb   :  { %v751_v52 = vmax.f32 %v746_v49, 0.0  ;;  %v1202_v53 = vpop.f32.mrb[11].mxu0 }
 0x4ed   :  { %v769_v54 = vpack.c.bf16 %v751_v52, %v751_v52 }
 0x4ef   :  { %1220 = vmatmul.mubr.bf16.vlgmr.msra.gmra.mrb[8].mxu1 %v769_v54 }
 0x5c2   :  { %v858_v58 = vpop.f32.mrb[8].mxu1 }
 0x5c3   :  { %v859_v59 = vadd.f32 %v1051_v57, %v858_v58  ;;  %v1221_v60 = vpop.f32.mrb[9].mxu1 }
 0x5c4   :  { %v861_v61 = vpop.f32.mrb[10].mxu1 }
 0x5c5   :  { %v864_v62 = vmax.f32 %v859_v59, 0.0  ;;  %v1222_v63 = vpop.f32.mrb[11].mxu1 }
 0x5c7   :  { %v882_v1 = vpack.c.bf16 %v864_v62, %v864_v62 }
 0x5c9   :  { %1240 = vmatmul.mubr.bf16.vlgmr.msra.gmra.mrb[12].mxu0 %v882_v1 }
 0x69c   :  { %v971_v2 = vpop.f32.mrb[12].mxu0 }
 0x69d   :  { %v972_v3 = vadd.f32 %v1060_v0, %v971_v2  ;;  %v1241_v4 = vpop.f32.mrb[13].mxu0 }
 0x69e   :  { %v974_v5 = vpop.f32.mrb[14].mxu0 }
 0x69f   :  { %v977_v6 = vmax.f32 %v972_v3, 0.0  ;;  %v1242_v7 = vpop.f32.mrb[15].mxu0 }
 0x6a1   :  { %978 = vst [vmem:[%s1850_s24] sm:$0xff] %v977_v6 }
 0x6a2   :  { %995 = vsyncpa [#allocation3], 1 }
 0x6a3   :  { %996 = vsyncpa [#allocation5], 1 }
 0x6a4   :  { %997 = vsyncpa [#allocation8], 1 }
 0x6a5   :  { %998 = vsyncpa [#allocation11], 1 }

</bundles_post_ra>
